<compile_context>
chip_gen: v7x
topology: tpu7x:2x2x1
jax: 0.10.0
libtpu: 0.0.40
codegen_flags: <defaults>
</compile_context>

<pallas_src>
import functools

import jax
import jax.numpy as jnp
from jax.experimental import pallas as pl
from jax.experimental.pallas import tpu as pltpu

VMEM = pltpu.MemorySpace.VMEM

# Slot indices of the 9 stacked DxD linear layers in W_dd / b_dd.
ENC_MSG, ENC_OUT, PRI_MSG, MU_L1, MU_L2, SIG_L1, SIG_L2, DEC_MSG, DEC_H = range(9)

# ----------------------------------------------------------------------------- fused Pallas kernel


def _fused_genzprot_kernel(
    # activations / graph structure
    h_atom_ref, xyz_ref, pref_a_ref, pool_ref,
    h_prior0_ref, h_dec0_ref, cg_xyz_ref, pref_c_ref, eps_ref,
    # weights
    w_dd_ref, b_dd_ref, w_ph_ref, b_ph_ref, w_do_ref, b_do_ref,
    # outputs
    mu_ref, sigma_ref, pmu_ref, psigma_ref, ic_ref,
    *, feature_dim, gamma, det):
    f32 = jnp.float32

    def lin(x, idx, act=False):
        y = jnp.dot(x, w_dd_ref[idx], preferred_element_type=f32) + b_dd_ref[idx]
        return jnp.tanh(y) if act else y

    def gated_adj(xyz, pref):
        # adj_ij = mask_ij * exp(-||xi - xj||^2 / gamma)
        #        = pref_ij * exp(2 * xi.xj / gamma)   (pref carries mask * exp(-(|xi|^2+|xj|^2)/g))
        gram = jax.lax.dot_general(xyz, xyz, (((1,), (1,)), ((), ())),
                                   preferred_element_type=f32)
        return pref * jnp.exp((2.0 / gamma) * gram)

    # ---- encoder: message passing on atoms, mean-pool to CG beads --------------------------------
    adj_a = gated_adj(xyz_ref[...], pref_a_ref[...])
    h = h_atom_ref[...]
    h = h + lin(jnp.dot(adj_a, h, preferred_element_type=f32), ENC_MSG, act=True)
    pooled = jnp.dot(pool_ref[...], h, preferred_element_type=f32)     # 1/count folded into pool
    s_i = lin(pooled, ENC_OUT)                                         # [n_cgs, D]

    # ---- CG adjacency: built once, reused by prior net AND decoder -------------------------------
    adj_c = gated_adj(cg_xyz_ref[...], pref_c_ref[...])

    # ---- prior net (mu / logvar heads stacked into one [D, 2D] matmul) ---------------------------
    hp = h_prior0_ref[...]
    hp = hp + lin(jnp.dot(adj_c, hp, preferred_element_type=f32), PRI_MSG, act=True)
    ph = jnp.dot(hp, w_ph_ref[...], preferred_element_type=f32) + b_ph_ref[...]
    pmu_ref[...] = ph[:, :feature_dim]
    psigma_ref[...] = 1e-12 + jnp.exp(0.5 * ph[:, feature_dim:])

    # ---- atom_munet / atom_sigmanet heads + fused reparametrization ------------------------------
    mu = lin(lin(s_i, MU_L1, act=True), MU_L2)
    logvar = lin(lin(s_i, SIG_L1, act=True), SIG_L2)
    sigma = 1e-12 + jnp.exp(0.5 * logvar)
    mu_ref[...] = mu
    sigma_ref[...] = sigma
    if det:
        z_sample = s_i
    else:
        z_sample = eps_ref[...] * sigma + mu

    # ---- equivariant-conv decoder -> internal coordinates ----------------------------------------
    hd = z_sample + h_dec0_ref[...]
    hd = hd + lin(jnp.dot(adj_c, hd, preferred_element_type=f32), DEC_MSG, act=True)
    hd = lin(hd, DEC_H, act=True)
    ic_ref[...] = jnp.dot(hd, w_do_ref[...], preferred_element_type=f32) + b_do_ref[...]


# ----------------------------------------------------------------------------- scatter-free prologue


def edge_prefactor(nbr_list, xyz, n_nodes, gamma):
    """Symmetric neighbor prefactor  mask_ij * exp(-(|xi|^2 + |xj|^2)/gamma)  without scatter.

    The distance gate exp(-d2/gamma) is completed inside the fused kernel via an MXU gram matmul,
    so no .at[].add scatter and no standalone adjacency kernel are needed.
    """
    src = jax.nn.one_hot(nbr_list[:, 0], n_nodes, dtype=jnp.float32)    # [E, n]
    dst = jax.nn.one_hot(nbr_list[:, 1], n_nodes, dtype=jnp.float32)
    m = src.T @ dst
    mask = m + m.T                                                      # symmetric edge mask
    sq = jnp.sum(xyz * xyz, axis=-1)
    return mask * jnp.exp(-(sq[:, None] + sq[None, :]) / gamma)


def mean_pool_matrix(mapping, n_cgs):
    """[n_cgs, n_atoms] mean-pooling matrix with the 1/count divide folded in."""
    m1h = jax.nn.one_hot(mapping, n_cgs, dtype=jnp.float32)             # [n_atoms, n_cgs]
    counts = jnp.clip(jnp.sum(m1h, axis=0), 1.0, None)
    return (m1h / counts[None, :]).T


# ----------------------------------------------------------------------------- params


def init_params(key, feature_dim, n_atom_types, n_cg_types, n_ic_per_cg=13, scale=0.1):
    D = feature_dim
    ks = jax.random.split(key, 9)
    return {
        "atom_embed": scale * jax.random.normal(ks[0], (n_atom_types, D), jnp.float32),
        "prior_embed": scale * jax.random.normal(ks[1], (n_cg_types, D), jnp.float32),
        "dec_embed": scale * jax.random.normal(ks[2], (n_cg_types, D), jnp.float32),
        # 9 stacked DxD linears (enc_msg, enc_out, prior_msg, munet l1/l2, signet l1/l2,
        # dec_msg, dec_h); biases pre-reshaped to [9,1,D].
        "W_dd": scale * jax.random.normal(ks[3], (9, D, D), jnp.float32),
        "b_dd": scale * jax.random.normal(ks[4], (9, 1, D), jnp.float32),
        # prior mu / logvar heads stacked into one [D, 2D] matmul.
        "W_ph": scale * jax.random.normal(ks[5], (D, 2 * D), jnp.float32),
        "b_ph": scale * jax.random.normal(ks[6], (1, 2 * D), jnp.float32),
        # decoder output head -> 3 * n_ic_per_cg internal coordinates per CG bead.
        "W_do": scale * jax.random.normal(ks[7], (D, 3 * n_ic_per_cg), jnp.float32),
        "b_do": scale * jax.random.normal(ks[8], (1, 3 * n_ic_per_cg), jnp.float32),
    }


# ----------------------------------------------------------------------------- GenZProt.forward


def genzprot_forward(params, batch, eps_key, n_cgs, n_ic_per_cg=13, det=False, gamma=4.0):
    # --- get_inputs ---
    xyz = batch["nxyz"][:, 1:]
    z = batch["nxyz"][:, 0].astype(jnp.int32)
    nbr_list = batch["nbr_list"]
    ic = batch["ic"]
    cg_xyz = batch["CG_nxyz"][:, 1:]
    cg_z = batch["CG_nxyz"][:, 0].astype(jnp.int32)
    mapping = batch["CG_mapping"]
    CG_nbr_list = batch["CG_nbr_list"]
    _num_CGs = batch["num_CGs"]   # fetched but unused downstream (as in the reference forward)

    n_atoms = xyz.shape[0]
    D = params["atom_embed"].shape[1]

    # --- tiny scatter-free XLA prologue (embedding gathers, masks, pooling, eps) ---
    # TODO(synk): dynamic embedding gathers and one-hot graph-structure construction have no clean
    # Pallas equivalent; they run as one small fused XLA prologue feeding the single fused kernel.
    h_atom = params["atom_embed"][z]
    h_prior0 = params["prior_embed"][cg_z]
    h_dec0 = params["dec_embed"][cg_z]
    pref_a = edge_prefactor(nbr_list, xyz, n_atoms, gamma)
    pref_c = edge_prefactor(CG_nbr_list, cg_xyz, n_cgs, gamma)
    pool = mean_pool_matrix(mapping, n_cgs)
    eps = jax.random.normal(eps_key, (n_cgs, D), jnp.float32)

    # --- single fused Pallas kernel: encoder + prior + heads + reparametrize + decoder ---
    kernel = functools.partial(_fused_genzprot_kernel,
                               feature_dim=D, gamma=gamma, det=det)
    out_shapes = (
        jax.ShapeDtypeStruct((n_cgs, D), jnp.float32),                # mu
        jax.ShapeDtypeStruct((n_cgs, D), jnp.float32),                # sigma
        jax.ShapeDtypeStruct((n_cgs, D), jnp.float32),                # H_prior_mu
        jax.ShapeDtypeStruct((n_cgs, D), jnp.float32),                # H_prior_sigma
        jax.ShapeDtypeStruct((n_cgs, 3 * n_ic_per_cg), jnp.float32),  # ic_recon (flat)
    )
    mu, sigma, h_prior_mu, h_prior_sigma, ic_flat = pl.pallas_call(
        kernel,
        out_shape=out_shapes,
        in_specs=[pl.BlockSpec(memory_space=VMEM)] * 15,
        out_specs=tuple(pl.BlockSpec(memory_space=VMEM) for _ in range(5)),
    )(h_atom, xyz, pref_a, pool, h_prior0, h_dec0, cg_xyz, pref_c, eps,
      params["W_dd"], params["b_dd"], params["W_ph"], params["b_ph"],
      params["W_do"], params["b_do"])

    ic_recon = ic_flat.reshape(n_cgs, n_ic_per_cg, 3)
    return mu, sigma, h_prior_mu, h_prior_sigma, ic, ic_recon


# ----------------------------------------------------------------------------- main

if __name__ == "__main__":
    N_ATOMS = 64
    N_CGS = 16
    ATOMS_PER_CG = N_ATOMS // N_CGS
    FEATURE_DIM = 128          # lane-dense: every DxD matmul / activation store fills full vregs
    N_IC_PER_CG = 13
    N_ATOM_TYPES = 10
    N_CG_TYPES = 20

    key = jax.random.PRNGKey(0)
    k_param, k_z, k_xyz, k_cgz, k_cgxyz, k_ic, k_eps = jax.random.split(key, 7)

    params = init_params(k_param, FEATURE_DIM, N_ATOM_TYPES, N_CG_TYPES, N_IC_PER_CG)

    # deterministic synthetic batch
    z_types = jax.random.randint(k_z, (N_ATOMS,), 0, N_ATOM_TYPES).astype(jnp.float32)
    xyz = jax.random.normal(k_xyz, (N_ATOMS, 3), jnp.float32)
    nxyz = jnp.concatenate([z_types[:, None], xyz], axis=1)            # [N_ATOMS, 4]

    cg_types = jax.random.randint(k_cgz, (N_CGS,), 0, N_CG_TYPES).astype(jnp.float32)
    cg_xyz = jax.random.normal(k_cgxyz, (N_CGS, 3), jnp.float32)
    cg_nxyz = jnp.concatenate([cg_types[:, None], cg_xyz], axis=1)     # [N_CGS, 4]

    nbr_list = jnp.stack([jnp.arange(N_ATOMS - 1), jnp.arange(1, N_ATOMS)], axis=1).astype(jnp.int32)
    cg_nbr_list = jnp.stack([jnp.arange(N_CGS - 1), jnp.arange(1, N_CGS)], axis=1).astype(jnp.int32)
    mapping = jnp.repeat(jnp.arange(N_CGS), ATOMS_PER_CG).astype(jnp.int32)
    num_cgs = jnp.array([N_CGS], jnp.int32)
    ic = jax.random.normal(k_ic, (N_CGS, N_IC_PER_CG, 3), jnp.float32)

    batch = {
        "nxyz": nxyz,
        "nbr_list": nbr_list,
        "ic": ic,
        "CG_nxyz": cg_nxyz,
        "CG_mapping": mapping,
        "CG_nbr_list": cg_nbr_list,
        "num_CGs": num_cgs,
    }

    fwd = jax.jit(functools.partial(genzprot_forward, n_cgs=N_CGS,
                                    n_ic_per_cg=N_IC_PER_CG, det=False))
    mu, sigma, h_prior_mu, h_prior_sigma, ic_out, ic_recon = fwd(params, batch, k_eps)
    jax.block_until_ready((mu, sigma, h_prior_mu, h_prior_sigma, ic_out, ic_recon))

    assert mu.shape == (N_CGS, FEATURE_DIM)
    assert sigma.shape == (N_CGS, FEATURE_DIM)
    assert h_prior_mu.shape == (N_CGS, FEATURE_DIM)
    assert h_prior_sigma.shape == (N_CGS, FEATURE_DIM)
    assert ic_out.shape == (N_CGS, N_IC_PER_CG, 3)
    assert ic_recon.shape == (N_CGS, N_IC_PER_CG, 3)
    assert bool(jnp.all(sigma > 0.0)) and bool(jnp.all(h_prior_sigma > 0.0))
    assert bool(jnp.all(jnp.isfinite(mu))) and bool(jnp.all(jnp.isfinite(ic_recon)))

    print("KERNEL_OK")
</pallas_src>

<mosaic_0001>
module attributes {stable_mosaic.version = 11 : i64} {
  func.func @_fused_genzprot_kernel(%arg0: memref<64x128xf32, #tpu.memory_space<vmem>>, %arg1: memref<64x3xf32, #tpu.memory_space<vmem>>, %arg2: memref<64x64xf32, #tpu.memory_space<vmem>>, %arg3: memref<16x64xf32, #tpu.memory_space<vmem>>, %arg4: memref<16x128xf32, #tpu.memory_space<vmem>>, %arg5: memref<16x128xf32, #tpu.memory_space<vmem>>, %arg6: memref<16x3xf32, #tpu.memory_space<vmem>>, %arg7: memref<16x16xf32, #tpu.memory_space<vmem>>, %arg8: memref<16x128xf32, #tpu.memory_space<vmem>>, %arg9: memref<9x128x128xf32, #tpu.memory_space<vmem>>, %arg10: memref<9x1x128xf32, #tpu.memory_space<vmem>>, %arg11: memref<128x256xf32, #tpu.memory_space<vmem>>, %arg12: memref<1x256xf32, #tpu.memory_space<vmem>>, %arg13: memref<128x39xf32, #tpu.memory_space<vmem>>, %arg14: memref<1x39xf32, #tpu.memory_space<vmem>>, %arg15: memref<16x128xf32, #tpu.memory_space<vmem>>, %arg16: memref<16x128xf32, #tpu.memory_space<vmem>>, %arg17: memref<16x128xf32, #tpu.memory_space<vmem>>, %arg18: memref<16x128xf32, #tpu.memory_space<vmem>>, %arg19: memref<16x39xf32, #tpu.memory_space<vmem>>) attributes {dimension_semantics = [], scalar_prefetch = 0 : i64, scratch_operands = 0 : i64, tpu.core_type = #tpu.core_type<tc>} {
    %c0 = arith.constant 0 : index
    %c0_0 = arith.constant 0 : index
    %0 = vector.load %arg1[%c0, %c0_0] : memref<64x3xf32, #tpu.memory_space<vmem>>, vector<64x3xf32>
    %c0_1 = arith.constant 0 : index
    %c0_2 = arith.constant 0 : index
    %1 = vector.load %arg2[%c0_1, %c0_2] : memref<64x64xf32, #tpu.memory_space<vmem>>, vector<64x64xf32>
    %cst = arith.constant dense<0.000000e+00> : vector<64x64xf32>
    %2 = tpu.matmul %0, %0, %cst {dimension_numbers = #tpu.dot_dimension_numbers<[1], [1], [0], [0], [0, 0, 1, 0], [], []>} : vector<64x3xf32>, vector<64x3xf32>, vector<64x64xf32> -> vector<64x64xf32>
    %cst_3 = arith.constant 5.000000e-01 : f32
    %3 = vector.broadcast %cst_3 : f32 to vector<64x64xf32>
    %4 = arith.mulf %3, %2 : vector<64x64xf32>
    %5 = math.exp %4 : vector<64x64xf32>
    %6 = arith.mulf %1, %5 : vector<64x64xf32>
    %c0_4 = arith.constant 0 : index
    %c0_5 = arith.constant 0 : index
    %7 = vector.load %arg0[%c0_4, %c0_5] : memref<64x128xf32, #tpu.memory_space<vmem>>, vector<64x128xf32>
    %cst_6 = arith.constant dense<0.000000e+00> : vector<64x128xf32>
    %8 = tpu.matmul %6, %7, %cst_6 {dimension_numbers = #tpu.dot_dimension_numbers<[1], [0], [0], [1], [0, 0, 1, 1], [], []>} : vector<64x64xf32>, vector<64x128xf32>, vector<64x128xf32> -> vector<64x128xf32>
    %c0_7 = arith.constant 0 : index
    %c0_8 = arith.constant 0 : index
    %c0_9 = arith.constant 0 : index
    %9 = vector.load %arg9[%c0_7, %c0_8, %c0_9] : memref<9x128x128xf32, #tpu.memory_space<vmem>>, vector<1x128x128xf32>
    %10 = vector.shape_cast %9 : vector<1x128x128xf32> to vector<128x128xf32>
    %cst_10 = arith.constant dense<0.000000e+00> : vector<64x128xf32>
    %11 = tpu.matmul %8, %10, %cst_10 {dimension_numbers = #tpu.dot_dimension_numbers<[1], [0], [0], [1], [0, 0, 1, 1], [], []>} : vector<64x128xf32>, vector<128x128xf32>, vector<64x128xf32> -> vector<64x128xf32>
    %c0_11 = arith.constant 0 : index
    %c0_12 = arith.constant 0 : index
    %c0_13 = arith.constant 0 : index
    %12 = vector.load %arg10[%c0_11, %c0_12, %c0_13] : memref<9x1x128xf32, #tpu.memory_space<vmem>>, vector<1x1x128xf32>
    %13 = vector.shape_cast %12 : vector<1x1x128xf32> to vector<1x128xf32>
    %14 = vector.broadcast %13 : vector<1x128xf32> to vector<64x128xf32>
    %15 = arith.addf %11, %14 : vector<64x128xf32>
    %16 = math.tanh %15 : vector<64x128xf32>
    %17 = arith.addf %7, %16 : vector<64x128xf32>
    %c0_14 = arith.constant 0 : index
    %c0_15 = arith.constant 0 : index
    %18 = vector.load %arg3[%c0_14, %c0_15] : memref<16x64xf32, #tpu.memory_space<vmem>>, vector<16x64xf32>
    %cst_16 = arith.constant dense<0.000000e+00> : vector<16x128xf32>
    %19 = tpu.matmul %18, %17, %cst_16 {dimension_numbers = #tpu.dot_dimension_numbers<[1], [0], [0], [1], [0, 0, 1, 1], [], []>} : vector<16x64xf32>, vector<64x128xf32>, vector<16x128xf32> -> vector<16x128xf32>
    %c1 = arith.constant 1 : index
    %c0_17 = arith.constant 0 : index
    %c0_18 = arith.constant 0 : index
    %20 = vector.load %arg9[%c1, %c0_17, %c0_18] : memref<9x128x128xf32, #tpu.memory_space<vmem>>, vector<1x128x128xf32>
    %21 = vector.shape_cast %20 : vector<1x128x128xf32> to vector<128x128xf32>
    %cst_19 = arith.constant dense<0.000000e+00> : vector<16x128xf32>
    %22 = tpu.matmul %19, %21, %cst_19 {dimension_numbers = #tpu.dot_dimension_numbers<[1], [0], [0], [1], [0, 0, 1, 1], [], []>} : vector<16x128xf32>, vector<128x128xf32>, vector<16x128xf32> -> vector<16x128xf32>
    %c1_20 = arith.constant 1 : index
    %c0_21 = arith.constant 0 : index
    %c0_22 = arith.constant 0 : index
    %23 = vector.load %arg10[%c1_20, %c0_21, %c0_22] : memref<9x1x128xf32, #tpu.memory_space<vmem>>, vector<1x1x128xf32>
    %24 = vector.shape_cast %23 : vector<1x1x128xf32> to vector<1x128xf32>
    %25 = vector.broadcast %24 : vector<1x128xf32> to vector<16x128xf32>
    %26 = arith.addf %22, %25 : vector<16x128xf32>
    %c0_23 = arith.constant 0 : index
    %c0_24 = arith.constant 0 : index
    %27 = vector.load %arg6[%c0_23, %c0_24] : memref<16x3xf32, #tpu.memory_space<vmem>>, vector<16x3xf32>
    %c0_25 = arith.constant 0 : index
    %c0_26 = arith.constant 0 : index
    %28 = vector.load %arg7[%c0_25, %c0_26] : memref<16x16xf32, #tpu.memory_space<vmem>>, vector<16x16xf32>
    %cst_27 = arith.constant dense<0.000000e+00> : vector<16x16xf32>
    %29 = tpu.matmul %27, %27, %cst_27 {dimension_numbers = #tpu.dot_dimension_numbers<[1], [1], [0], [0], [0, 0, 1, 0], [], []>} : vector<16x3xf32>, vector<16x3xf32>, vector<16x16xf32> -> vector<16x16xf32>
    %cst_28 = arith.constant 5.000000e-01 : f32
    %30 = vector.broadcast %cst_28 : f32 to vector<16x16xf32>
    %31 = arith.mulf %30, %29 : vector<16x16xf32>
    %32 = math.exp %31 : vector<16x16xf32>
    %33 = arith.mulf %28, %32 : vector<16x16xf32>
    %c0_29 = arith.constant 0 : index
    %c0_30 = arith.constant 0 : index
    %34 = vector.load %arg4[%c0_29, %c0_30] : memref<16x128xf32, #tpu.memory_space<vmem>>, vector<16x128xf32>
    %cst_31 = arith.constant dense<0.000000e+00> : vector<16x128xf32>
    %35 = tpu.matmul %33, %34, %cst_31 {dimension_numbers = #tpu.dot_dimension_numbers<[1], [0], [0], [1], [0, 0, 1, 1], [], []>} : vector<16x16xf32>, vector<16x128xf32>, vector<16x128xf32> -> vector<16x128xf32>
    %c2 = arith.constant 2 : index
    %c0_32 = arith.constant 0 : index
    %c0_33 = arith.constant 0 : index
    %36 = vector.load %arg9[%c2, %c0_32, %c0_33] : memref<9x128x128xf32, #tpu.memory_space<vmem>>, vector<1x128x128xf32>
    %37 = vector.shape_cast %36 : vector<1x128x128xf32> to vector<128x128xf32>
    %cst_34 = arith.constant dense<0.000000e+00> : vector<16x128xf32>
    %38 = tpu.matmul %35, %37, %cst_34 {dimension_numbers = #tpu.dot_dimension_numbers<[1], [0], [0], [1], [0, 0, 1, 1], [], []>} : vector<16x128xf32>, vector<128x128xf32>, vector<16x128xf32> -> vector<16x128xf32>
    %c2_35 = arith.constant 2 : index
    %c0_36 = arith.constant 0 : index
    %c0_37 = arith.constant 0 : index
    %39 = vector.load %arg10[%c2_35, %c0_36, %c0_37] : memref<9x1x128xf32, #tpu.memory_space<vmem>>, vector<1x1x128xf32>
    %40 = vector.shape_cast %39 : vector<1x1x128xf32> to vector<1x128xf32>
    %41 = vector.broadcast %40 : vector<1x128xf32> to vector<16x128xf32>
    %42 = arith.addf %38, %41 : vector<16x128xf32>
    %43 = math.tanh %42 : vector<16x128xf32>
    %44 = arith.addf %34, %43 : vector<16x128xf32>
    %c0_38 = arith.constant 0 : index
    %c0_39 = arith.constant 0 : index
    %45 = vector.load %arg11[%c0_38, %c0_39] : memref<128x256xf32, #tpu.memory_space<vmem>>, vector<128x256xf32>
    %cst_40 = arith.constant dense<0.000000e+00> : vector<16x256xf32>
    %46 = tpu.matmul %44, %45, %cst_40 {dimension_numbers = #tpu.dot_dimension_numbers<[1], [0], [0], [1], [0, 0, 1, 1], [], []>} : vector<16x128xf32>, vector<128x256xf32>, vector<16x256xf32> -> vector<16x256xf32>
    %c0_41 = arith.constant 0 : index
    %c0_42 = arith.constant 0 : index
    %47 = vector.load %arg12[%c0_41, %c0_42] : memref<1x256xf32, #tpu.memory_space<vmem>>, vector<1x256xf32>
    %48 = vector.broadcast %47 : vector<1x256xf32> to vector<16x256xf32>
    %49 = arith.addf %46, %48 : vector<16x256xf32>
    %50 = vector.extract_strided_slice %49 {offsets = [0, 0], sizes = [16, 128], strides = [1, 1]} : vector<16x256xf32> to vector<16x128xf32>
    %c0_43 = arith.constant 0 : index
    %c0_44 = arith.constant 0 : index
    %51 = vector.load %arg17[%c0_43, %c0_44] : memref<16x128xf32, #tpu.memory_space<vmem>>, vector<16x128xf32>
    tpu.vector_store %arg17[%c0_43, %c0_44], %50 {strides = array<i32>} : memref<16x128xf32, #tpu.memory_space<vmem>>, vector<16x128xf32>,
    %52 = vector.extract_strided_slice %49 {offsets = [0, 128], sizes = [16, 128], strides = [1, 1]} : vector<16x256xf32> to vector<16x128xf32>
    %cst_45 = arith.constant 5.000000e-01 : f32
    %53 = vector.broadcast %cst_45 : f32 to vector<16x128xf32>
    %54 = arith.mulf %53, %52 : vector<16x128xf32>
    %55 = math.exp %54 : vector<16x128xf32>
    %cst_46 = arith.constant 9.99999996E-13 : f32
    %56 = vector.broadcast %cst_46 : f32 to vector<16x128xf32>
    %57 = arith.addf %56, %55 : vector<16x128xf32>
    %c0_47 = arith.constant 0 : index
    %c0_48 = arith.constant 0 : index
    %58 = vector.load %arg18[%c0_47, %c0_48] : memref<16x128xf32, #tpu.memory_space<vmem>>, vector<16x128xf32>
    tpu.vector_store %arg18[%c0_47, %c0_48], %57 {strides = array<i32>} : memref<16x128xf32, #tpu.memory_space<vmem>>, vector<16x128xf32>,
    %c3 = arith.constant 3 : index
    %c0_49 = arith.constant 0 : index
    %c0_50 = arith.constant 0 : index
    %59 = vector.load %arg9[%c3, %c0_49, %c0_50] : memref<9x128x128xf32, #tpu.memory_space<vmem>>, vector<1x128x128xf32>
    %60 = vector.shape_cast %59 : vector<1x128x128xf32> to vector<128x128xf32>
    %cst_51 = arith.constant dense<0.000000e+00> : vector<16x128xf32>
    %61 = tpu.matmul %26, %60, %cst_51 {dimension_numbers = #tpu.dot_dimension_numbers<[1], [0], [0], [1], [0, 0, 1, 1], [], []>} : vector<16x128xf32>, vector<128x128xf32>, vector<16x128xf32> -> vector<16x128xf32>
    %c3_52 = arith.constant 3 : index
    %c0_53 = arith.constant 0 : index
    %c0_54 = arith.constant 0 : index
    %62 = vector.load %arg10[%c3_52, %c0_53, %c0_54] : memref<9x1x128xf32, #tpu.memory_space<vmem>>, vector<1x1x128xf32>
    %63 = vector.shape_cast %62 : vector<1x1x128xf32> to vector<1x128xf32>
    %64 = vector.broadcast %63 : vector<1x128xf32> to vector<16x128xf32>
    %65 = arith.addf %61, %64 : vector<16x128xf32>
    %66 = math.tanh %65 : vector<16x128xf32>
    %c4 = arith.constant 4 : index
    %c0_55 = arith.constant 0 : index
    %c0_56 = arith.constant 0 : index
    %67 = vector.load %arg9[%c4, %c0_55, %c0_56] : memref<9x128x128xf32, #tpu.memory_space<vmem>>, vector<1x128x128xf32>
    %68 = vector.shape_cast %67 : vector<1x128x128xf32> to vector<128x128xf32>
    %cst_57 = arith.constant dense<0.000000e+00> : vector<16x128xf32>
    %69 = tpu.matmul %66, %68, %cst_57 {dimension_numbers = #tpu.dot_dimension_numbers<[1], [0], [0], [1], [0, 0, 1, 1], [], []>} : vector<16x128xf32>, vector<128x128xf32>, vector<16x128xf32> -> vector<16x128xf32>
    %c4_58 = arith.constant 4 : index
    %c0_59 = arith.constant 0 : index
    %c0_60 = arith.constant 0 : index
    %70 = vector.load %arg10[%c4_58, %c0_59, %c0_60] : memref<9x1x128xf32, #tpu.memory_space<vmem>>, vector<1x1x128xf32>
    %71 = vector.shape_cast %70 : vector<1x1x128xf32> to vector<1x128xf32>
    %72 = vector.broadcast %71 : vector<1x128xf32> to vector<16x128xf32>
    %73 = arith.addf %69, %72 : vector<16x128xf32>
    %c5 = arith.constant 5 : index
    %c0_61 = arith.constant 0 : index
    %c0_62 = arith.constant 0 : index
    %74 = vector.load %arg9[%c5, %c0_61, %c0_62] : memref<9x128x128xf32, #tpu.memory_space<vmem>>, vector<1x128x128xf32>
    %75 = vector.shape_cast %74 : vector<1x128x128xf32> to vector<128x128xf32>
    %cst_63 = arith.constant dense<0.000000e+00> : vector<16x128xf32>
    %76 = tpu.matmul %26, %75, %cst_63 {dimension_numbers = #tpu.dot_dimension_numbers<[1], [0], [0], [1], [0, 0, 1, 1], [], []>} : vector<16x128xf32>, vector<128x128xf32>, vector<16x128xf32> -> vector<16x128xf32>
    %c5_64 = arith.constant 5 : index
    %c0_65 = arith.constant 0 : index
    %c0_66 = arith.constant 0 : index
    %77 = vector.load %arg10[%c5_64, %c0_65, %c0_66] : memref<9x1x128xf32, #tpu.memory_space<vmem>>, vector<1x1x128xf32>
    %78 = vector.shape_cast %77 : vector<1x1x128xf32> to vector<1x128xf32>
    %79 = vector.broadcast %78 : vector<1x128xf32> to vector<16x128xf32>
    %80 = arith.addf %76, %79 : vector<16x128xf32>
    %81 = math.tanh %80 : vector<16x128xf32>
    %c6 = arith.constant 6 : index
    %c0_67 = arith.constant 0 : index
    %c0_68 = arith.constant 0 : index
    %82 = vector.load %arg9[%c6, %c0_67, %c0_68] : memref<9x128x128xf32, #tpu.memory_space<vmem>>, vector<1x128x128xf32>
    %83 = vector.shape_cast %82 : vector<1x128x128xf32> to vector<128x128xf32>
    %cst_69 = arith.constant dense<0.000000e+00> : vector<16x128xf32>
    %84 = tpu.matmul %81, %83, %cst_69 {dimension_numbers = #tpu.dot_dimension_numbers<[1], [0], [0], [1], [0, 0, 1, 1], [], []>} : vector<16x128xf32>, vector<128x128xf32>, vector<16x128xf32> -> vector<16x128xf32>
    %c6_70 = arith.constant 6 : index
    %c0_71 = arith.constant 0 : index
    %c0_72 = arith.constant 0 : index
    %85 = vector.load %arg10[%c6_70, %c0_71, %c0_72] : memref<9x1x128xf32, #tpu.memory_space<vmem>>, vector<1x1x128xf32>
    %86 = vector.shape_cast %85 : vector<1x1x128xf32> to vector<1x128xf32>
    %87 = vector.broadcast %86 : vector<1x128xf32> to vector<16x128xf32>
    %88 = arith.addf %84, %87 : vector<16x128xf32>
    %cst_73 = arith.constant 5.000000e-01 : f32
    %89 = vector.broadcast %cst_73 : f32 to vector<16x128xf32>
    %90 = arith.mulf %89, %88 : vector<16x128xf32>
    %91 = math.exp %90 : vector<16x128xf32>
    %cst_74 = arith.constant 9.99999996E-13 : f32
    %92 = vector.broadcast %cst_74 : f32 to vector<16x128xf32>
    %93 = arith.addf %92, %91 : vector<16x128xf32>
    %c0_75 = arith.constant 0 : index
    %c0_76 = arith.constant 0 : index
    %94 = vector.load %arg15[%c0_75, %c0_76] : memref<16x128xf32, #tpu.memory_space<vmem>>, vector<16x128xf32>
    tpu.vector_store %arg15[%c0_75, %c0_76], %73 {strides = array<i32>} : memref<16x128xf32, #tpu.memory_space<vmem>>, vector<16x128xf32>,
    %c0_77 = arith.constant 0 : index
    %c0_78 = arith.constant 0 : index
    %95 = vector.load %arg16[%c0_77, %c0_78] : memref<16x128xf32, #tpu.memory_space<vmem>>, vector<16x128xf32>
    tpu.vector_store %arg16[%c0_77, %c0_78], %93 {strides = array<i32>} : memref<16x128xf32, #tpu.memory_space<vmem>>, vector<16x128xf32>,
    %c0_79 = arith.constant 0 : index
    %c0_80 = arith.constant 0 : index
    %96 = vector.load %arg8[%c0_79, %c0_80] : memref<16x128xf32, #tpu.memory_space<vmem>>, vector<16x128xf32>
    %97 = arith.mulf %96, %93 : vector<16x128xf32>
    %98 = arith.addf %97, %73 : vector<16x128xf32>
    %c0_81 = arith.constant 0 : index
    %c0_82 = arith.constant 0 : index
    %99 = vector.load %arg5[%c0_81, %c0_82] : memref<16x128xf32, #tpu.memory_space<vmem>>, vector<16x128xf32>
    %100 = arith.addf %98, %99 : vector<16x128xf32>
    %cst_83 = arith.constant dense<0.000000e+00> : vector<16x128xf32>
    %101 = tpu.matmul %33, %100, %cst_83 {dimension_numbers = #tpu.dot_dimension_numbers<[1], [0], [0], [1], [0, 0, 1, 1], [], []>} : vector<16x16xf32>, vector<16x128xf32>, vector<16x128xf32> -> vector<16x128xf32>
    %c7 = arith.constant 7 : index
    %c0_84 = arith.constant 0 : index
    %c0_85 = arith.constant 0 : index
    %102 = vector.load %arg9[%c7, %c0_84, %c0_85] : memref<9x128x128xf32, #tpu.memory_space<vmem>>, vector<1x128x128xf32>
    %103 = vector.shape_cast %102 : vector<1x128x128xf32> to vector<128x128xf32>
    %cst_86 = arith.constant dense<0.000000e+00> : vector<16x128xf32>
    %104 = tpu.matmul %101, %103, %cst_86 {dimension_numbers = #tpu.dot_dimension_numbers<[1], [0], [0], [1], [0, 0, 1, 1], [], []>} : vector<16x128xf32>, vector<128x128xf32>, vector<16x128xf32> -> vector<16x128xf32>
    %c7_87 = arith.constant 7 : index
    %c0_88 = arith.constant 0 : index
    %c0_89 = arith.constant 0 : index
    %105 = vector.load %arg10[%c7_87, %c0_88, %c0_89] : memref<9x1x128xf32, #tpu.memory_space<vmem>>, vector<1x1x128xf32>
    %106 = vector.shape_cast %105 : vector<1x1x128xf32> to vector<1x128xf32>
    %107 = vector.broadcast %106 : vector<1x128xf32> to vector<16x128xf32>
    %108 = arith.addf %104, %107 : vector<16x128xf32>
    %109 = math.tanh %108 : vector<16x128xf32>
    %110 = arith.addf %100, %109 : vector<16x128xf32>
    %c8 = arith.constant 8 : index
    %c0_90 = arith.constant 0 : index
    %c0_91 = arith.constant 0 : index
    %111 = vector.load %arg9[%c8, %c0_90, %c0_91] : memref<9x128x128xf32, #tpu.memory_space<vmem>>, vector<1x128x128xf32>
    %112 = vector.shape_cast %111 : vector<1x128x128xf32> to vector<128x128xf32>
    %cst_92 = arith.constant dense<0.000000e+00> : vector<16x128xf32>
    %113 = tpu.matmul %110, %112, %cst_92 {dimension_numbers = #tpu.dot_dimension_numbers<[1], [0], [0], [1], [0, 0, 1, 1], [], []>} : vector<16x128xf32>, vector<128x128xf32>, vector<16x128xf32> -> vector<16x128xf32>
    %c8_93 = arith.constant 8 : index
    %c0_94 = arith.constant 0 : index
    %c0_95 = arith.constant 0 : index
    %114 = vector.load %arg10[%c8_93, %c0_94, %c0_95] : memref<9x1x128xf32, #tpu.memory_space<vmem>>, vector<1x1x128xf32>
    %115 = vector.shape_cast %114 : vector<1x1x128xf32> to vector<1x128xf32>
    %116 = vector.broadcast %115 : vector<1x128xf32> to vector<16x128xf32>
    %117 = arith.addf %113, %116 : vector<16x128xf32>
    %118 = math.tanh %117 : vector<16x128xf32>
    %c0_96 = arith.constant 0 : index
    %c0_97 = arith.constant 0 : index
    %119 = vector.load %arg13[%c0_96, %c0_97] : memref<128x39xf32, #tpu.memory_space<vmem>>, vector<128x39xf32>
    %cst_98 = arith.constant dense<0.000000e+00> : vector<16x39xf32>
    %120 = tpu.matmul %118, %119, %cst_98 {dimension_numbers = #tpu.dot_dimension_numbers<[1], [0], [0], [1], [0, 0, 1, 1], [], []>} : vector<16x128xf32>, vector<128x39xf32>, vector<16x39xf32> -> vector<16x39xf32>
    %c0_99 = arith.constant 0 : index
    %c0_100 = arith.constant 0 : index
    %121 = vector.load %arg14[%c0_99, %c0_100] : memref<1x39xf32, #tpu.memory_space<vmem>>, vector<1x39xf32>
    %122 = vector.broadcast %121 : vector<1x39xf32> to vector<16x39xf32>
    %123 = arith.addf %120, %122 : vector<16x39xf32>
    %c0_101 = arith.constant 0 : index
    %c0_102 = arith.constant 0 : index
    %124 = vector.load %arg19[%c0_101, %c0_102] : memref<16x39xf32, #tpu.memory_space<vmem>>, vector<16x39xf32>
    tpu.vector_store %arg19[%c0_101, %c0_102], %123 {strides = array<i32>} : memref<16x39xf32, #tpu.memory_space<vmem>>, vector<16x39xf32>,
    return
  }
}

</mosaic_0001>

<bundles_post_ra>
// kernel: genzprot_forward.1
= control target key start
LH: loop header
LB: loop body
LE: loop exit
PB: predicated region body
PF: predicated region fallthrough
CT: control target
= control target key end

     0   :  { %s4458_s0 = inlined_call_operand.vmem [shape: f32[64,128], index: 0, kind: input, shape index: {}]   ;;  %s4459_s1 = inlined_call_operand.vmem [shape: f32[64,3], index: 1, kind: input, shape index: {}]   ;;  %s4460_s2 = inlined_call_operand.vmem [shape: f32[64,64], index: 2, kind: input, shape index: {}]   ;;  %s4461_s3 = inlined_call_operand.vmem [shape: f32[16,64], index: 3, kind: input, shape index: {}]   ;;  %s4462_s4 = inlined_call_operand.vmem [shape: f32[16,128], index: 4, kind: input, shape index: {}]   ;;  %s4463_s5 = inlined_call_operand.vmem [shape: f32[16,128], index: 5, kind: input, shape index: {}]   ;;  %s4464_s6 = inlined_call_operand.vmem [shape: f32[16,3], index: 6, kind: input, shape index: {}]   ;;  %s4465_s7 = inlined_call_operand.vmem [shape: f32[16,16], index: 7, kind: input, shape index: {}]   ;;  %s4466_s8 = inlined_call_operand.vmem [shape: f32[16,128], index: 8, kind: input, shape index: {}]   ;;  %s4467_s9 = inlined_call_operand.vmem [shape: f32[9,128,128], index: 9, kind: input, shape index: {}]   ;;  %s4468_s10 = inlined_call_operand.vmem [shape: f32[9,1,128], index: 10, kind: input, shape index: {}]   ;;  %s4469_s11 = inlined_call_operand.vmem [shape: f32[128,256], index: 11, kind: input, shape index: {}]   ;;  %s4470_s12 = inlined_call_operand.vmem [shape: f32[1,256], index: 12, kind: input, shape index: {}]   ;;  %s4471_s13 = inlined_call_operand.vmem [shape: f32[128,39], index: 13, kind: input, shape index: {}]   ;;  %s4472_s14 = inlined_call_operand.vmem [shape: f32[1,39], index: 14, kind: input, shape index: {}]   ;;  %s4473_s15 = inlined_call_operand.hbm [shape: f32[16,128], index: 15, kind: output, shape index: {0}]   ;;  %s4474_s16 = inlined_call_operand.hbm [shape: f32[16,128], index: 16, kind: output, shape index: {1}]   ;;  %s4475_s17 = inlined_call_operand.hbm [shape: f32[16,128], index: 17, kind: output, shape index: {2}]   ;;  %s4476_s18 = inlined_call_operand.hbm [shape: f32[16,128], index: 18, kind: output, shape index: {3}]   ;;  %s4477_s19 = inlined_call_operand.vmem [shape: f32[16,39], index: 19, kind: output, shape index: {4}]  }
   0x1   :  { %4482 = sst [smem:[#allocation12_spill]] %s4458_s0 }
   0x2   :  { %4483 = sst [smem:[#allocation13_spill]] %s4459_s1 }
   0x3   :  { %4484 = sst [smem:[#allocation14_spill]] %s4460_s2 }
   0x4   :  { %4485 = sst [smem:[#allocation15_spill]] %s4461_s3 }
   0x5   :  { %25 = vsyncpa [#allocation3], 0 }
   0x6   :  { %26 = vsyncpa [#allocation5], 0  ;;  %s4486_s20 = sld [smem:[#allocation13_spill]]  ;;  %vm74_vm0 = vcmask 23552  }
   0x7   :  { %vm3570_vm1 = vmpackc.low %vm74_vm0, %vm74_vm0 }
   0xc   :  { %v58_v0 = vld [vmem:[%s4486_s20] sm:$0xff]  ;;  %v59_v1 = vld [vmem:[%s4486_s20 + $0x8] sm:$0xff]  ;;  %v60_v2 = vld [vmem:[%s4486_s20 + $0x10] sm:$0xff] }
   0xd   :  { %v2865_v3 = vpack.c.bf16 %v59_v1, %v58_v0  ;;  %v61_v5 = vld [vmem:[%s4486_s20 + $0x18] sm:$0xff]  ;;  %2426 = vmatprep.mubr.msk.f32.mxu0 %vm74_vm0, %v58_v0 }
   0xe   :  { %v2871_v6 = vpack.c.bf16 %v61_v5, %v60_v2 }
   0xf   :  { %2867 = vmatprep.subr.msk.bf16.mxu0 %vm3570_vm1, %v2865_v3 }
  0x10   :  { %27 = vsyncpa [#allocation8], 0  ;;  %2870 = vmatpush3.bf16.xpose.msk.msra.mxu0 %vm3570_vm1, %v2865_v3  ;;  %v62_v7 = vld [vmem:[%s4486_s20 + $0x20] sm:$0xff]  ;;  %v63_v8 = vld [vmem:[%s4486_s20 + $0x28] sm:$0xff]  ;;  %s4489_s1 = sld [smem:[#allocation12_spill]]  ;;  %s4490_s25 = sld [smem:[#allocation14_spill]] }
  0x11   :  { %2873 = vmatprep.subr.msk.bf16.mxu0 %vm3570_vm1, %v2871_v6  ;;  %v2877_v9 = vpack.c.bf16 %v63_v8, %v62_v7  ;;  %v64_v10 = vld [vmem:[%s4486_s20 + $0x30] sm:$0xff]  ;;  %v65_v11 = vld [vmem:[%s4486_s20 + $0x38] sm:$0xff]  ;;  %v374_v25 = vld [vmem:[%s4467_s9] sm:$0xff]  ;;  %vm244_vm2 = vcmask 523264   ;;  %s4491_s28 = sld [smem:[#allocation15_spill]]  ;;  %vm796_vm3 = vcmask 130048  }
  0x12   :  { %v2883_v12 = vpack.c.bf16 %v65_v11, %v64_v10  ;;  %v375_v26 = vld [vmem:[%s4467_s9 + $0x8] sm:$0xff]  ;;  %v376_v27 = vld [vmem:[%s4467_s9 + $0x10] sm:$0xff]  ;;  %v377_v29 = vld [vmem:[%s4467_s9 + $0x18] sm:$0xff] }
  0x13   :  { %v2905_v28 = vpack.c.bf16 %v375_v26, %v374_v25  ;;  %v2909_v30 = vpack.c.bf16 %v377_v29, %v376_v27  ;;  %v378_v31 = vld [vmem:[%s4467_s9 + $0x20] sm:$0xff]  ;;  %v379_v32 = vld [vmem:[%s4467_s9 + $0x28] sm:$0xff]  ;;  %v380_v34 = vld [vmem:[%s4467_s9 + $0x30] sm:$0xff] }
  0x14   :  { %v2913_v33 = vpack.c.bf16 %v379_v32, %v378_v31  ;;  %v381_v35 = vld [vmem:[%s4467_s9 + $0x38] sm:$0xff]  ;;  %v382_v37 = vld [vmem:[%s4467_s9 + $0x40] sm:$0xff]  ;;  %v383_v38 = vld [vmem:[%s4467_s9 + $0x48] sm:$0xff] }
  0x15   :  { %2906 = vmatprep.subr.bf16.mxu1 %v2905_v28  ;;  %v2917_v36 = vpack.c.bf16 %v381_v35, %v380_v34  ;;  %v2921_v39 = vpack.c.bf16 %v383_v38, %v382_v37  ;;  %v384_v40 = vld [vmem:[%s4467_s9 + $0x50] sm:$0xff]  ;;  %v385_v41 = vld [vmem:[%s4467_s9 + $0x58] sm:$0xff]  ;;  %v386_v43 = vld [vmem:[%s4467_s9 + $0x60] sm:$0xff] }
  0x16   :  { %v3616_v13 = vld [vmem:[%s4489_s1] sm:$0xff]  ;;  %v3621_v14 = vld [vmem:[%s4489_s1 + $0x8] sm:$0xff]  ;;  %v3628_v16 = vld [vmem:[%s4489_s1 + $0x10] sm:$0xff]  ;;  %2908 = vmatpush3.bf16.msra.mxu1 %v2905_v28  ;;  %v2925_v42 = vpack.c.bf16 %v385_v41, %v384_v40 }
  0x17   :  { %v2889_v15 = vpack.c.bf16 %v3621_v14, %v3616_v13  ;;  %v3633_v17 = vld [vmem:[%s4489_s1 + $0x18] sm:$0xff]  ;;  %v3640_v19 = vld [vmem:[%s4489_s1 + $0x20] sm:$0xff]  ;;  %v3645_v20 = vld [vmem:[%s4489_s1 + $0x28] sm:$0xff]  ;;  %2910 = vmatprep.subr.bf16.mxu1 %v2909_v30 }
  0x18   :  { %2876 = vmatpush3.bf16.xpose.msk.msra.mxu0 %vm3570_vm1, %v2871_v6  ;;  %v2893_v18 = vpack.c.bf16 %v3633_v17, %v3628_v16  ;;  %v2897_v21 = vpack.c.bf16 %v3645_v20, %v3640_v19  ;;  %v3652_v22 = vld [vmem:[%s4489_s1 + $0x30] sm:$0xff]  ;;  %v3657_v23 = vld [vmem:[%s4489_s1 + $0x38] sm:$0xff]  ;;  %v387_v44 = vld [vmem:[%s4467_s9 + $0x68] sm:$0xff] }
  0x19   :  { %2879 = vmatprep.subr.msk.bf16.mxu0 %vm3570_vm1, %v2877_v9  ;;  %v2901_v24 = vpack.c.bf16 %v3657_v23, %v3652_v22  ;;  %v2929_v45 = vpack.c.bf16 %v387_v44, %v386_v43  ;;  %v388_v46 = vld [vmem:[%s4467_s9 + $0x70] sm:$0xff]  ;;  %v389_v47 = vld [vmem:[%s4467_s9 + $0x78] sm:$0xff]  ;;  %v71_v32 = vld [vmem:[%s4490_s25 + $0x28] sm:$0xff] }
  0x1a   :  { %2912 = vmatpush3.bf16.msra.mxu1 %v2909_v30  ;;  %v2933_v48 = vpack.c.bf16 %v389_v47, %v388_v46  ;;  %v69_v26 = vld [vmem:[%s4490_s25 + $0x18] sm:$0xff]  ;;  %v70_v30 = vld [vmem:[%s4490_s25 + $0x20] sm:$0xff]  ;;  %v702_v43 = vld [vmem:[%s4464_s6 + $0x8] sm:$0xff] }
  0x1b   :  { %2914 = vmatprep.subr.bf16.mxu1 %v2913_v33  ;;  %v73_v38 = vld [vmem:[%s4490_s25 + $0x38] sm:$0xff]  ;;  %v518_v4 = vld [vmem:[%s4491_s28] sm:$0xff] }
  0x1e   :  { %2916 = vmatpush3.bf16.msra.mxu1 %v2913_v33 }
  0x1f   :  { %2918 = vmatprep.subr.bf16.mxu1 %v2917_v36 }
  0x20   :  { %2882 = vmatpush3.bf16.xpose.msk.msra.mxu0 %vm3570_vm1, %v2877_v9 }
  0x21   :  { %2885 = vmatprep.subr.msk.bf16.mxu0 %vm3570_vm1, %v2883_v12 }
  0x22   :  { %2920 = vmatpush3.bf16.msra.mxu1 %v2917_v36  ;;  %v72_v36 = vld [vmem:[%s4490_s25 + $0x30] sm:$0xff] }
  0x23   :  { %2922 = vmatprep.subr.bf16.mxu1 %v2921_v39 }
  0x26   :  { %2924 = vmatpush3.bf16.msra.mxu1 %v2921_v39 }
  0x27   :  { %2926 = vmatprep.subr.bf16.mxu1 %v2925_v42 }
  0x28   :  { %2888 = vmatpush3.bf16.xpose.msk.msra.mxu0 %vm3570_vm1, %v2883_v12 }
  0x29   :  { %2890 = vmatprep.subr.bf16.mxu0 %v2889_v15 }
  0x2a   :  { %2928 = vmatpush3.bf16.msra.mxu1 %v2925_v42  ;;  %v701_v42 = vld [vmem:[%s4464_s6] sm:$0xff] }
  0x2b   :  { %2930 = vmatprep.subr.bf16.mxu1 %v2929_v45  ;;  %v2985_v44 = vpack.c.bf16 %v702_v43, %v701_v42 }
  0x2e   :  { %2932 = vmatpush3.bf16.msra.mxu1 %v2929_v45 }
  0x2f   :  { %2427 = vmatmul.mubr.msk.f32.vlgmr.msra.gmra.mrb[0].mxu0 %vm74_vm0, %v59_v1  ;;  %2934 = vmatprep.subr.bf16.mxu1 %v2933_v48 }
  0x30   :  { %2429 = vmatprep.mubr.msk.f32.mxu0 %vm74_vm0, %v60_v2  ;;  %2892 = vmatpush3.bf16.msra.mxu0 %v2889_v15 }
  0x31   :  { %2894 = vmatprep.subr.bf16.mxu0 %v2893_v18 }
  0x32   :  { %2936 = vmatpush3.bf16.msra.mxu1 %v2933_v48 }
  0x33   :  { %2430 = vmatmul.mubr.msk.f32.gmra.mrb[2].mxu0 %vm74_vm0, %v61_v5  ;;  %2987 = vmatprep.subr.msk.bf16.mxu1 %vm3570_vm1, %v2985_v44 }
  0x34   :  { %2432 = vmatprep.mubr.msk.f32.mxu0 %vm74_vm0, %v62_v7  ;;  %2896 = vmatpush3.bf16.msra.mxu0 %v2893_v18 }
  0x35   :  { %2898 = vmatprep.subr.bf16.mxu0 %v2897_v21 }
  0x37   :  { %2433 = vmatmul.mubr.msk.f32.gmra.mrb[4].mxu0 %vm74_vm0, %v63_v8  ;;  %v66_v8 = vld [vmem:[%s4490_s25] sm:$0xff] }
  0x38   :  { %2435 = vmatprep.mubr.msk.f32.mxu0 %vm74_vm0, %v64_v10  ;;  %2900 = vmatpush3.bf16.msra.mxu0 %v2897_v21  ;;  %v67_v10 = vld [vmem:[%s4490_s25 + $0x8] sm:$0xff] }
  0x39   :  { %2902 = vmatprep.subr.bf16.mxu0 %v2901_v24 }
  0x3b   :  { %2436 = vmatmul.mubr.msk.f32.gmra.mrb[6].mxu0 %vm74_vm0, %v65_v11 }
  0x3c   :  { %2904 = vmatpush3.bf16.msra.mxu0 %v2901_v24  ;;  %v68_v24 = vld [vmem:[%s4490_s25 + $0x10] sm:$0xff] }
 0x102   :  { %v2428_v49 = vpop.f32.mrb[0].mxu0 }
 0x103   :  { %v205_v50 = vmul.f32 0.5, %v2428_v49  ;;  %v165_v51 = vpop.f32.mrb[1].mxu0 }
 0x104   :  { %v204_v52 = vmul.f32 0.5, %v165_v51 }
 0x105   :  { %v214_v53 = vmul.f32 1.442695, %v205_v50 }
 0x106   :  { %v212_v54 = vmul.f32 1.442695, %v204_v52  ;;  %v2431_v55 = vpop.f32.mrb[2].mxu0 }
 0x107   :  { %3294 = vpow2.f32 %v214_v53  ;;  %v207_v56 = vmul.f32 0.5, %v2431_v55  ;;  %v175_v57 = vpop.f32.mrb[3].mxu0  ;;  %v3760_v53 = vld [vmem:[%s4462_s4] sm:$0xff] }
 0x108   :  { %3296 = vpow2.f32 %v212_v54  ;;  %v206_v58 = vmul.f32 0.5, %v175_v57  ;;  %v3765_v54 = vld [vmem:[%s4462_s4 + $0x8] sm:$0xff] }
 0x109   :  { %v218_v59 = vmul.f32 1.442695, %v207_v56  ;;  %v2991_v55 = vpack.c.bf16 %v3765_v54, %v3760_v53  ;;  %v2014_v56 = vld [vmem:[%s4468_s10] ss:$0 sm:$0xff] }
 0x10a   :  { %v216_v60 = vmul.f32 1.442695, %v206_v58  ;;  %v2434_v61 = vpop.f32.mrb[4].mxu0 }
 0x10b   :  { %3298 = vpow2.f32 %v218_v59  ;;  %v209_v62 = vmul.f32 0.5, %v2434_v61  ;;  %v185_v63 = vpop.f32.mrb[5].mxu0 }
 0x10c   :  { %3300 = vpow2.f32 %v216_v60  ;;  %v208_v0 = vmul.f32 0.5, %v185_v63 }
 0x10d   :  { %v222_v1 = vmul.f32 1.442695, %v209_v62 }
 0x10e   :  { %v220_v2 = vmul.f32 1.442695, %v208_v0  ;;  %v2437_v3 = vpop.f32.mrb[6].mxu0 }
 0x10f   :  { %3302 = vpow2.f32 %v222_v1  ;;  %v211_v5 = vmul.f32 0.5, %v2437_v3  ;;  %v195_v6 = vpop.f32.mrb[7].mxu0 }
 0x110   :  { %3304 = vpow2.f32 %v220_v2  ;;  %v210_v7 = vmul.f32 0.5, %v195_v6 }
 0x111   :  { %v3295_v9 = vpop.eup %3294  ;;  %v226_v11 = vmul.f32 1.442695, %v211_v5 }
 0x112   :  { %v3297_v12 = vpop.eup %3296  ;;  %v224_v15 = vmul.f32 1.442695, %v210_v7  ;;  %v229_v21 = vmul.f32 %v3295_v9, %v67_v10 }
 0x113   :  { %3306 = vpow2.f32 %v226_v11  ;;  %v228_v18 = vmul.f32 %v3297_v12, %v66_v8 }
 0x114   :  { %3308 = vpow2.f32 %v224_v15 }
 0x115   :  { %v3299_v25 = vpop.eup %3298  ;;  %2454 = vmatprep.mubr.msk.f32.mxu0 %vm244_vm2, %v228_v18 }
 0x116   :  { %v3301_v27 = vpop.eup %3300  ;;  %2455 = vmatmul.mubr.msk.f32.vlgmr.msra.gmra.mrb[8].mxu0 %vm244_vm2, %v229_v21  ;;  %v231_v29 = vmul.f32 %v3299_v25, %v69_v26 }
 0x117   :  { %v230_v28 = vmul.f32 %v3301_v27, %v68_v24 }
 0x119   :  { %v3303_v31 = vpop.eup %3302  ;;  %2457 = vmatprep.mubr.msk.f32.mxu0 %vm244_vm2, %v230_v28 }
 0x11a   :  { %v3305_v33 = vpop.eup %3304  ;;  %2458 = vmatmul.mubr.msk.f32.gmra.mrb[10].mxu0 %vm244_vm2, %v231_v29  ;;  %v233_v35 = vmul.f32 %v3303_v31, %v71_v32 }
 0x11b   :  { %v232_v34 = vmul.f32 %v3305_v33, %v70_v30 }
 0x11d   :  { %v3307_v37 = vpop.eup %3306  ;;  %2460 = vmatprep.mubr.msk.f32.mxu0 %vm244_vm2, %v232_v34 }
 0x11e   :  { %v3309_v39 = vpop.eup %3308  ;;  %2461 = vmatmul.mubr.msk.f32.gmra.mrb[12].mxu0 %vm244_vm2, %v233_v35  ;;  %v235_v41 = vmul.f32 %v3307_v37, %v73_v38 }
 0x11f   :  { %v234_v40 = vmul.f32 %v3309_v39, %v72_v36  ;;  %v2018_v39 = vld [vmem:[%s4467_s9 + $0x88] sm:$0xff] }
 0x121   :  { %2463 = vmatprep.mubr.msk.f32.mxu0 %vm244_vm2, %v234_v40 }
 0x122   :  { %2464 = vmatmul.mubr.msk.f32.gmra.mrb[14].mxu0 %vm244_vm2, %v235_v41 }
 0x123   :  { %2526 = vmatprep.mubr.msk.f32.mxu0 %vm244_vm2, %v518_v4  ;;  %v2024_v4 = vld [vmem:[%s4467_s9 + $0xb8] sm:$0xff] }
 0x1e9   :  { %v2456_v45 = vpop.f32.mrb[8].mxu0 }
 0x1ea   :  { %v335_v46 = vpop.f32.mrb[9].mxu0 }
 0x1eb   :  { %2498 = vmatprep.mubr.f32.mxu1 %v335_v46 }
 0x1ec   :  { %2499 = vmatmul.mubr.f32.vlgmr.msra.gmra.mrb[0].mxu1 %v2456_v45  ;;  %v519_v45 = vld [vmem:[%s4491_s28 + $0x8] sm:$0xff] }
 0x1ed   :  { %v2459_v47 = vpop.f32.mrb[10].mxu0  ;;  %2990 = vmatpush3.bf16.xpose.msk.msra.mxu1 %vm3570_vm1, %v2985_v44 }
 0x1ee   :  { %v345_v48 = vpop.f32.mrb[11].mxu0  ;;  %2992 = vmatprep.subr.bf16.mxu1 %v2991_v55 }
 0x1ef   :  { %2501 = vmatprep.mubr.f32.mxu1 %v345_v48 }
 0x1f0   :  { %2502 = vmatmul.mubr.f32.gmra.mrb[2].mxu1 %v2459_v47 }
 0x1f1   :  { %v2462_v49 = vpop.f32.mrb[12].mxu0 }
 0x1f2   :  { %v355_v50 = vpop.f32.mrb[13].mxu0 }
 0x1f3   :  { %2504 = vmatprep.mubr.f32.mxu1 %v355_v50  ;;  %v2022_v50 = vld [vmem:[%s4467_s9 + $0xa8] sm:$0xff] }
 0x1f4   :  { %2505 = vmatmul.mubr.f32.gmra.mrb[4].mxu1 %v2462_v49  ;;  %v2021_v49 = vld [vmem:[%s4467_s9 + $0xa0] sm:$0xff] }
 0x1f5   :  { %v2465_v51 = vpop.f32.mrb[14].mxu0 }
 0x1f6   :  { %v365_v52 = vpop.f32.mrb[15].mxu0 }
 0x1f7   :  { %2507 = vmatprep.mubr.f32.mxu1 %v365_v52  ;;  %v2023_v52 = vld [vmem:[%s4467_s9 + $0xb0] sm:$0xff] }
 0x1f8   :  { %2508 = vmatmul.mubr.f32.gmra.mrb[6].mxu1 %v2465_v51  ;;  %v2961_v51 = vpack.c.bf16 %v2022_v50, %v2021_v49  ;;  %v2069_v50 = vld [vmem:[%s4467_s9 + $0x1d0] sm:$0xff] }
 0x1f9   :  { %2568 = vmatprep.mubr.msk.f32.mxu1 %vm74_vm0, %v701_v42  ;;  %v2019_v42 = vld [vmem:[%s4467_s9 + $0x90] sm:$0xff] }
 0x1fc   :  { %2569 = vmatmul.mubr.msk.f32.vlgmr.msra.gmra.mrb[8].mxu1 %vm74_vm0, %v702_v43  ;;  %v2020_v43 = vld [vmem:[%s4467_s9 + $0x98] sm:$0xff] }
 0x1fd   :  { %2994 = vmatpush3.bf16.msra.mxu1 %v2991_v55  ;;  %v2957_v48 = vpack.c.bf16 %v2020_v43, %v2019_v42  ;;  %v2965_v55 = vpack.c.bf16 %v2024_v4, %v2023_v52  ;;  %v2065_v43 = vld [vmem:[%s4467_s9 + $0x1b0] sm:$0xff]  ;;  %v2071_v4 = vld [vmem:[%s4467_s9 + $0x1e0] sm:$0xff] }
 0x2bf   :  { %v2500_v57 = vpop.f32.mrb[0].mxu1 }
 0x2c0   :  { %v469_v58 = vadd.f32 %v2500_v57, %v2014_v56  ;;  %v463_v59 = vpop.f32.mrb[1].mxu1  ;;  %v2026_v57 = vld [vmem:[%s4467_s9 + $0xc8] sm:$0xff] }
 0x2c1   :  { %v464_v60 = vadd.f32 %v2014_v56, %v463_v59  ;;  %v2027_v59 = vld [vmem:[%s4467_s9 + $0xd0] sm:$0xff] }
 0x2c2   :  { %3310 = vtanh.f32 %v469_v58 }
 0x2c3   :  { %3312 = vtanh.f32 %v464_v60  ;;  %v2503_v61 = vpop.f32.mrb[2].mxu1  ;;  %v2028_v60 = vld [vmem:[%s4467_s9 + $0xd8] sm:$0xff] }
 0x2c4   :  { %v479_v62 = vadd.f32 %v2503_v61, %v2014_v56  ;;  %v473_v63 = vpop.f32.mrb[3].mxu1  ;;  %v2973_v61 = vpack.c.bf16 %v2028_v60, %v2027_v59  ;;  %v2095_v60 = vld [vmem:[%s4467_s9 + $0x280] sm:$0xff] }
 0x2c5   :  { %v474_v0 = vadd.f32 %v2014_v56, %v473_v63  ;;  %v2030_v63 = vld [vmem:[%s4467_s9 + $0xe8] sm:$0xff] }
 0x2c6   :  { %3314 = vtanh.f32 %v479_v62  ;;  %v2029_v62 = vld [vmem:[%s4467_s9 + $0xe0] sm:$0xff] }
 0x2c7   :  { %3316 = vtanh.f32 %v474_v0  ;;  %v2506_v1 = vpop.f32.mrb[4].mxu1  ;;  %v2977_v0 = vpack.c.bf16 %v2030_v63, %v2029_v62  ;;  %v983_v63 = vld [vmem:[%s4469_s11 + $0x8] sm:$0xff] }
 0x2c8   :  { %v489_v2 = vadd.f32 %v2506_v1, %v2014_v56  ;;  %v483_v3 = vpop.f32.mrb[5].mxu1  ;;  %v2031_v1 = vld [vmem:[%s4467_s9 + $0xf0] sm:$0xff] }
 0x2c9   :  { %v484_v5 = vadd.f32 %v2014_v56, %v483_v3 }
 0x2ca   :  { %3318 = vtanh.f32 %v489_v2  ;;  %v2032_v2 = vld [vmem:[%s4467_s9 + $0xf8] sm:$0xff] }
 0x2cb   :  { %3320 = vtanh.f32 %v484_v5  ;;  %v2509_v6 = vpop.f32.mrb[6].mxu1  ;;  %v2981_v3 = vpack.c.bf16 %v2032_v2, %v2031_v1  ;;  %v2041_v5 = vld [vmem:[%s4467_s9 + $0x100] sm:$0xff] }
 0x2cc   :  { %v3311_v7 = vpop.eup %3310  ;;  %v499_v8 = vadd.f32 %v2509_v6, %v2014_v56  ;;  %v493_v9 = vpop.f32.mrb[7].mxu1  ;;  %v2042_v6 = vld [vmem:[%s4467_s9 + $0x108] sm:$0xff]  ;;  %v982_v1 = vld [vmem:[%s4469_s11] sm:$0xff] }
 0x2cd   :  { %v3313_v10 = vpop.eup %3312  ;;  %v494_v11 = vadd.f32 %v2014_v56, %v493_v9  ;;  %v511_v12 = vadd.f32 %v3311_v7, %v3621_v14  ;;  %v2025_v56 = vld [vmem:[%s4467_s9 + $0xc0] sm:$0xff]  ;;  %v2043_v7 = vld [vmem:[%s4467_s9 + $0x110] sm:$0xff]  ;;  %v2044_v9 = vld [vmem:[%s4467_s9 + $0x118] sm:$0xff] }
 0x2ce   :  { %3322 = vtanh.f32 %v499_v8  ;;  %v510_v15 = vadd.f32 %v3313_v10, %v3616_v13  ;;  %v2969_v58 = vpack.c.bf16 %v2026_v57, %v2025_v56  ;;  %v2995_v8 = vpack.c.bf16 %v2042_v6, %v2041_v5  ;;  %v2073_v57 = vld [vmem:[%s4467_s9 + $0x1f0] sm:$0xff]  ;;  %v987_v5 = vld [vmem:[%s4469_s11 + $0x28] sm:$0xff]  ;;  %v989_v6 = vld [vmem:[%s4469_s11 + $0x38] sm:$0xff] }
 0x2cf   :  { %3324 = vtanh.f32 %v494_v11  ;;  %v2570_v18 = vpop.f32.mrb[8].mxu1  ;;  %v2999_v10 = vpack.c.bf16 %v2044_v9, %v2043_v7  ;;  %v2045_v11 = vld [vmem:[%s4467_s9 + $0x120] sm:$0xff]  ;;  %v3452_v7 = vmov 0.0   ;;  %v3031_v9 = vpack.c.bf16 %v989_v6, %v987_v5 }
 0x2d0   :  { %v3315_v21 = vpop.eup %3314  ;;  %v2937_v24 = vpack.c.bf16 %v511_v12, %v510_v15  ;;  %v787_v25 = vmul.f32 0.5, %v2570_v18  ;;  %v777_v26 = vpop.f32.mrb[9].mxu1  ;;  %v2046_v12 = vld [vmem:[%s4467_s9 + $0x128] sm:$0xff]  ;;  %2996 = vmatprep.subr.bf16.mxu1 %v2995_v8  ;;  %v2047_v18 = vld [vmem:[%s4467_s9 + $0x130] sm:$0xff]  ;;  %v2099_v6 = vld [vmem:[%s4467_s9 + $0x2a0] sm:$0xff] }
 0x2d1   :  { %v3317_v27 = vpop.eup %3316  ;;  %v513_v28 = vadd.f32 %v3315_v21, %v3633_v17  ;;  %v786_v29 = vmul.f32 0.5, %v777_v26  ;;  %v3003_v15 = vpack.c.bf16 %v2046_v12, %v2045_v11  ;;  %v2048_v21 = vld [vmem:[%s4467_s9 + $0x138] sm:$0xff]  ;;  %v2050_v26 = vld [vmem:[%s4467_s9 + $0x148] sm:$0xff]  ;;  %v988_v11 = vld [vmem:[%s4469_s11 + $0x30] sm:$0xff] }
 0x2d2   :  { %2938 = vmatprep.subr.bf16.mxu0 %v2937_v24  ;;  %v512_v30 = vadd.f32 %v3317_v27, %v3628_v16  ;;  %v790_v31 = vmul.f32 1.442695, %v787_v25  ;;  %v2017_v16 = vld [vmem:[%s4467_s9 + $0x80] sm:$0xff]  ;;  %v991_v12 = vld [vmem:[%s4469_s11 + $0x48] sm:$0xff] }
 0x2d3   :  { %2940 = vmatpush3.bf16.msra.mxu0 %v2937_v24  ;;  %v788_v32 = vmul.f32 1.442695, %v786_v29  ;;  %v2953_v41 = vpack.c.bf16 %v2018_v39, %v2017_v16  ;;  %v3007_v24 = vpack.c.bf16 %v2048_v21, %v2047_v18  ;;  %v2049_v25 = vld [vmem:[%s4467_s9 + $0x140] sm:$0xff]  ;;  %v2052_v29 = vld [vmem:[%s4467_s9 + $0x158] sm:$0xff] }
 0x2d4   :  { %v3319_v14 = vpop.eup %3318  ;;  %v2941_v33 = vpack.c.bf16 %v513_v28, %v512_v30  ;;  %3326 = vpow2.f32 %v790_v31  ;;  %v3011_v27 = vpack.c.bf16 %v2050_v26, %v2049_v25  ;;  %v2051_v28 = vld [vmem:[%s4467_s9 + $0x150] sm:$0xff]  ;;  %v2053_v31 = vld [vmem:[%s4467_s9 + $0x160] sm:$0xff]  ;;  %v995_v26 = vld [vmem:[%s4469_s11 + $0x68] sm:$0xff] }
 0x2d5   :  { %v3321_v13 = vpop.eup %3320  ;;  %v515_v34 = vadd.f32 %v3319_v14, %v3645_v20  ;;  %3328 = vpow2.f32 %v788_v32  ;;  %v3015_v30 = vpack.c.bf16 %v2052_v29, %v2051_v28  ;;  %v2054_v32 = vld [vmem:[%s4467_s9 + $0x168] sm:$0xff]  ;;  %v992_v25 = vld [vmem:[%s4469_s11 + $0x50] sm:$0xff] }
 0x2d6   :  { %2942 = vmatprep.subr.bf16.mxu0 %v2941_v33  ;;  %v514_v35 = vadd.f32 %v3321_v13, %v3640_v19  ;;  %v704_v19 = vld [vmem:[%s4465_s7 + $0x8] sm:$0xff]  ;;  %v3019_v14 = vpack.c.bf16 %v2054_v32, %v2053_v31  ;;  %v2056_v13 = vld [vmem:[%s4467_s9 + $0x178] sm:$0xff]  ;;  %v996_v31 = vld [vmem:[%s4469_s11 + $0x70] sm:$0xff] }
 0x2d7   :  { %2944 = vmatpush3.bf16.msra.mxu0 %v2941_v33  ;;  %v2055_v33 = vld [vmem:[%s4467_s9 + $0x170] sm:$0xff]  ;;  %v999_v32 = vld [vmem:[%s4469_s11 + $0x88] sm:$0xff] }
 0x2d8   :  { %v3323_v36 = vpop.eup %3322  ;;  %v2945_v17 = vpack.c.bf16 %v515_v34, %v514_v35  ;;  %v3023_v34 = vpack.c.bf16 %v2056_v13, %v2055_v33  ;;  %v2059_v35 = vld [vmem:[%s4467_s9 + $0x180] sm:$0xff] }
 0x2d9   :  { %v3325_v37 = vpop.eup %3324  ;;  %v517_v38 = vadd.f32 %v3323_v36, %v3657_v23  ;;  %v703_v23 = vld [vmem:[%s4465_s7] sm:$0xff]  ;;  %v2060_v36 = vld [vmem:[%s4467_s9 + $0x188] sm:$0xff] }
 0x2da   :  { %2946 = vmatprep.subr.bf16.mxu0 %v2945_v17  ;;  %v516_v20 = vadd.f32 %v3325_v37, %v3652_v22  ;;  %v2061_v37 = vld [vmem:[%s4467_s9 + $0x190] sm:$0xff] }
 0x2db   :  { %2948 = vmatpush3.bf16.msra.mxu0 %v2945_v17  ;;  %v3059_v17 = vpack.c.bf16 %v2060_v36, %v2059_v35  ;;  %v1000_v35 = vld [vmem:[%s4469_s11 + $0x90] sm:$0xff]  ;;  %v1003_v36 = vld [vmem:[%s4469_s11 + $0xa8] sm:$0xff] }
 0x2dc   :  { %v2949_v40 = vpack.c.bf16 %v517_v38, %v516_v20  ;;  %v2062_v38 = vld [vmem:[%s4467_s9 + $0x198] sm:$0xff] }
 0x2de   :  { %v3327_v22 = vpop.eup %3326  ;;  %2950 = vmatprep.subr.bf16.mxu0 %v2949_v40 }
 0x2df   :  { %v3329_v44 = vpop.eup %3328  ;;  %2952 = vmatpush3.bf16.msra.mxu0 %v2949_v40  ;;  %v3801_v46 = vmul.f32 %v3327_v22, %v704_v19  ;;  %v3063_v19 = vpack.c.bf16 %v2062_v38, %v2061_v37  ;;  %v2066_v22 = vld [vmem:[%s4467_s9 + $0x1b8] sm:$0xff] }
 0x2e0   :  { %v3803_v47 = vmul.f32 %v3329_v44, %v703_v23  ;;  %2954 = vmatprep.subr.bf16.mxu0 %v2953_v41  ;;  %v2064_v23 = vld [vmem:[%s4467_s9 + $0x1a8] sm:$0xff]  ;;  %v3071_v44 = vpack.c.bf16 %v2066_v22, %v2065_v43  ;;  %v1013_v22 = vld [vmem:[%s4469_s11 + $0xf8] sm:$0xff] }
 0x2e1   :  { %v1011_v43 = vld [vmem:[%s4469_s11 + $0xe8] sm:$0xff] }
 0x2e2   :  { %2527 = vmatmul.mubr.msk.f32.vlgmr.msra.gmra.mrb[16].mxu0 %vm244_vm2, %v519_v45  ;;  %2575 = vmatprep.mubr.msk.f32.mxu1 %vm796_vm3, %v3803_v47  ;;  %v2067_v45 = vld [vmem:[%s4467_s9 + $0x1c0] sm:$0xff] }
 0x2e3   :  { %2576 = vmatmul.mubr.msk.f32.vlgmr.msra.gmra.mrb[10].mxu1 %vm796_vm3, %v3801_v46  ;;  %2956 = vmatpush3.bf16.msra.mxu0 %v2953_v41  ;;  %v2063_v41 = vld [vmem:[%s4467_s9 + $0x1a0] sm:$0xff] }
 0x2e4   :  { %2958 = vmatprep.subr.bf16.mxu0 %v2957_v48  ;;  %2998 = vmatpush3.bf16.msra.mxu1 %v2995_v8  ;;  %v3067_v42 = vpack.c.bf16 %v2064_v23, %v2063_v41  ;;  %v1006_v23 = vld [vmem:[%s4469_s11 + $0xc0] sm:$0xff] }
 0x2e5   :  { %3000 = vmatprep.subr.bf16.mxu1 %v2999_v10 }
 0x2e7   :  { %2960 = vmatpush3.bf16.msra.mxu0 %v2957_v48  ;;  %v2068_v48 = vld [vmem:[%s4467_s9 + $0x1c8] sm:$0xff] }
 0x2e8   :  { %2962 = vmatprep.subr.bf16.mxu0 %v2961_v51  ;;  %3002 = vmatpush3.bf16.msra.mxu1 %v2999_v10  ;;  %v3075_v49 = vpack.c.bf16 %v2068_v48, %v2067_v45  ;;  %v986_v10 = vld [vmem:[%s4469_s11 + $0x20] sm:$0xff]  ;;  %v3055_v45 = vpack.c.bf16 %v1013_v22, %v1011_v43  ;;  %v2092_v22 = vld [vmem:[%s4467_s9 + $0x278] sm:$0xff] }
 0x2e9   :  { %3004 = vmatprep.subr.bf16.mxu1 %v3003_v15  ;;  %v3033_v18 = vpack.c.bf16 %v988_v11, %v986_v10  ;;  %v1010_v48 = vld [vmem:[%s4469_s11 + $0xe0] sm:$0xff]  ;;  %v2101_v10 = vld [vmem:[%s4467_s9 + $0x2b0] sm:$0xff]  ;;  %v2102_v11 = vld [vmem:[%s4467_s9 + $0x2b8] sm:$0xff] }
 0x2eb   :  { %2964 = vmatpush3.bf16.msra.mxu0 %v2961_v51  ;;  %v2070_v51 = vld [vmem:[%s4467_s9 + $0x1d8] sm:$0xff] }
 0x2ec   :  { %2966 = vmatprep.subr.bf16.mxu0 %v2965_v55  ;;  %3006 = vmatpush3.bf16.msra.mxu1 %v3003_v15  ;;  %v3079_v52 = vpack.c.bf16 %v2070_v51, %v2069_v50  ;;  %v993_v15 = vld [vmem:[%s4469_s11 + $0x58] sm:$0xff]  ;;  %v2077_v50 = vld [vmem:[%s4467_s9 + $0x200] sm:$0xff]  ;;  %v2078_v51 = vld [vmem:[%s4467_s9 + $0x208] sm:$0xff] }
 0x2ed   :  { %3008 = vmatprep.subr.bf16.mxu1 %v3007_v24  ;;  %v3035_v21 = vpack.c.bf16 %v993_v15, %v991_v12  ;;  %v3135_v12 = vpack.c.bf16 %v2102_v11, %v2101_v10  ;;  %v2103_v15 = vld [vmem:[%s4467_s9 + $0x2c0] sm:$0xff]  ;;  %v2118_v11 = vld [vmem:[%s4467_s9 + $0x328] sm:$0xff] }
 0x2ee   :  { %v2117_v10 = vld [vmem:[%s4467_s9 + $0x320] sm:$0xff] }
 0x2ef   :  { %2968 = vmatpush3.bf16.msra.mxu0 %v2965_v55  ;;  %v2072_v55 = vld [vmem:[%s4467_s9 + $0x1e8] sm:$0xff] }
 0x2f0   :  { %2970 = vmatprep.subr.bf16.mxu0 %v2969_v58  ;;  %3010 = vmatpush3.bf16.msra.mxu1 %v3007_v24  ;;  %v3083_v56 = vpack.c.bf16 %v2072_v55, %v2071_v4  ;;  %v990_v24 = vld [vmem:[%s4469_s11 + $0x40] sm:$0xff]  ;;  %v3091_v4 = vpack.c.bf16 %v2078_v51, %v2077_v50  ;;  %v1016_v51 = vlaneseq }
 0x2f1   :  { %3012 = vmatprep.subr.bf16.mxu1 %v3011_v27  ;;  %v3037_v28 = vpack.c.bf16 %v992_v25, %v990_v24  ;;  %v2034_v55 = vld [vmem:[%s4468_s10 + $0x1] ss:$0 sm:$0xff]  ;;  %v2080_v24 = vld [vmem:[%s4467_s9 + $0x218] sm:$0xff]  ;;  %v2076_v50 = vld [vmem:[%s4468_s10 + $0x3] ss:$0 sm:$0xff] }
 0x2f3   :  { %2972 = vmatpush3.bf16.msra.mxu0 %v2969_v58  ;;  %v2074_v58 = vld [vmem:[%s4467_s9 + $0x1f8] sm:$0xff] }
 0x2f4   :  { %2974 = vmatprep.subr.bf16.mxu0 %v2973_v61  ;;  %3014 = vmatpush3.bf16.msra.mxu1 %v3011_v27  ;;  %v3087_v59 = vpack.c.bf16 %v2074_v58, %v2073_v57  ;;  %v997_v27 = vld [vmem:[%s4469_s11 + $0x78] sm:$0xff]  ;;  %v2097_v57 = vld [vmem:[%s4467_s9 + $0x290] sm:$0xff] }
 0x2f5   :  { %3016 = vmatprep.subr.bf16.mxu1 %v3015_v30  ;;  %v3039_v29 = vpack.c.bf16 %v997_v27, %v995_v26  ;;  %v2098_v58 = vld [vmem:[%s4467_s9 + $0x298] sm:$0xff]  ;;  %v2105_v27 = vld [vmem:[%s4467_s9 + $0x2d0] sm:$0xff] }
 0x2f7   :  { %2976 = vmatpush3.bf16.msra.mxu0 %v2973_v61  ;;  %v2096_v61 = vld [vmem:[%s4467_s9 + $0x288] sm:$0xff] }
 0x2f8   :  { %2978 = vmatprep.subr.bf16.mxu0 %v2977_v0  ;;  %3018 = vmatpush3.bf16.msra.mxu1 %v3015_v30  ;;  %v3948_v62 = vpack.c.bf16 %v2096_v61, %v2095_v60  ;;  %v994_v30 = vld [vmem:[%s4469_s11 + $0x60] sm:$0xff] }
 0x2f9   :  { %3020 = vmatprep.subr.bf16.mxu1 %v3019_v14  ;;  %v3041_v33 = vpack.c.bf16 %v996_v31, %v994_v30 }
 0x2fb   :  { %2980 = vmatpush3.bf16.msra.mxu0 %v2977_v0  ;;  %v985_v0 = vld [vmem:[%s4469_s11 + $0x18] sm:$0xff] }
 0x2fc   :  { %2982 = vmatprep.subr.bf16.mxu0 %v2981_v3  ;;  %3022 = vmatpush3.bf16.msra.mxu1 %v3019_v14  ;;  %v3027_v2 = vpack.c.bf16 %v985_v0, %v983_v63  ;;  %v1001_v14 = vld [vmem:[%s4469_s11 + $0x98] sm:$0xff] }
 0x2fd   :  { %3024 = vmatprep.subr.bf16.mxu1 %v3023_v34  ;;  %v3043_v13 = vpack.c.bf16 %v1001_v14, %v999_v32  ;;  %v2081_v32 = vld [vmem:[%s4467_s9 + $0x220] sm:$0xff]  ;;  %v2082_v14 = vld [vmem:[%s4467_s9 + $0x228] sm:$0xff] }
 0x2ff   :  { %2984 = vmatpush3.bf16.msra.mxu0 %v2981_v3  ;;  %v984_v3 = vld [vmem:[%s4469_s11 + $0x10] sm:$0xff] }
 0x300   :  { %3026 = vmatpush3.bf16.msra.mxu1 %v3023_v34  ;;  %v3029_v8 = vpack.c.bf16 %v984_v3, %v982_v1  ;;  %3028 = vmatprep.subr.bf16.mxu0 %v3027_v2  ;;  %v998_v34 = vld [vmem:[%s4469_s11 + $0x80] sm:$0xff]  ;;  %v3127_v3 = vpack.c.bf16 %v2098_v58, %v2097_v57  ;;  %v1017_v57 = vshrl.u32 %v1016_v51, 7 }
 0x301   :  { %3060 = vmatprep.subr.bf16.mxu1 %v3059_v17  ;;  %v3045_v37 = vpack.c.bf16 %v1000_v35, %v998_v34  ;;  %v2083_v34 = vld [vmem:[%s4467_s9 + $0x230] sm:$0xff] }
 0x302   :  { %v1018_v58 = vsub.s32 0, %v1017_v57 }
 0x3b5   :  { %v2528_v16 = vpop.f32.mrb[16].mxu0 }
 0x3b6   :  { %v592_v39 = vpop.f32.mrb[17].mxu0  ;;  %v2577_v20 = vpop.f32.mrb[10].mxu1 }
 0x3b7   :  { %2561 = vmatprep.mubr.f32.mxu0 %v592_v39  ;;  %v869_v40 = vpop.f32.mrb[11].mxu1  ;;  %v1004_v39 = vld [vmem:[%s4469_s11 + $0xb0] sm:$0xff] }
 0x3b8   :  { %2562 = vmatmul.mubr.f32.vlgmr.msra.gmra.mrb[18].mxu0 %v2528_v16  ;;  %2610 = vmatprep.mubr.f32.mxu1 %v869_v40  ;;  %v1002_v16 = vld [vmem:[%s4469_s11 + $0xa0] sm:$0xff]  ;;  %v1009_v40 = vld [vmem:[%s4469_s11 + $0xd8] sm:$0xff] }
 0x3b9   :  { %2611 = vmatmul.mubr.f32.vlgmr.msra.gmra.mrb[12].mxu1 %v2577_v20  ;;  %1090 = vmatprep.mubr.f32.mxu0 %v3452_v7  ;;  %v1007_v20 = vld [vmem:[%s4469_s11 + $0xc8] sm:$0xff] }
 0x3ba   :  { %3062 = vmatpush3.bf16.msra.mxu1 %v3059_v17  ;;  %3030 = vmatpush1.bf16.msra.mxu0 %v3029_v8  ;;  %v1005_v17 = vld [vmem:[%s4469_s11 + $0xb8] sm:$0xff]  ;;  %v3051_v41 = vpack.c.bf16 %v1009_v40, %v1007_v20  ;;  %v2100_v8 = vld [vmem:[%s4467_s9 + $0x2a8] sm:$0xff]  ;;  %v2087_v40 = vld [vmem:[%s4467_s9 + $0x250] sm:$0xff] }
 0x3bb   :  { %3064 = vmatprep.subr.bf16.mxu1 %v3063_v19  ;;  %3032 = vmatprep.subr.bf16.mxu0 %v3031_v9  ;;  %v3047_v38 = vpack.c.bf16 %v1005_v17, %v1003_v36  ;;  %v3131_v9 = vpack.c.bf16 %v2100_v8, %v2099_v6  ;;  %v2109_v36 = vld [vmem:[%s4467_s9 + $0x2f0] sm:$0xff]  ;;  %v2110_v17 = vld [vmem:[%s4467_s9 + $0x2f8] sm:$0xff] }
 0x3be   :  { %3066 = vmatpush3.bf16.msra.mxu1 %v3063_v19  ;;  %3034 = vmatpush1.bf16.msra.mxu0 %v3033_v18  ;;  %v3049_v19 = vpack.c.bf16 %v1004_v39, %v1002_v16  ;;  %v2086_v16 = vld [vmem:[%s4467_s9 + $0x248] sm:$0xff]  ;;  %v3151_v39 = vpack.c.bf16 %v2110_v17, %v2109_v36 }
 0x3bf   :  { %3068 = vmatprep.subr.bf16.mxu1 %v3067_v42  ;;  %3036 = vmatprep.subr.bf16.mxu0 %v3035_v21  ;;  %v2079_v21 = vld [vmem:[%s4467_s9 + $0x210] sm:$0xff]  ;;  %v2126_v36 = vld [vmem:[%s4467_s9 + $0x368] sm:$0xff] }
 0x3c0   :  { %v3095_v30 = vpack.c.bf16 %v2080_v24, %v2079_v21 }
 0x3c2   :  { %3070 = vmatpush3.bf16.msra.mxu1 %v3067_v42  ;;  %3038 = vmatpush1.bf16.msra.mxu0 %v3037_v28  ;;  %v1008_v42 = vld [vmem:[%s4469_s11 + $0xd0] sm:$0xff]  ;;  %v2106_v28 = vld [vmem:[%s4467_s9 + $0x2d8] sm:$0xff] }
 0x3c3   :  { %3072 = vmatprep.subr.bf16.mxu1 %v3071_v44  ;;  %3040 = vmatprep.subr.bf16.mxu0 %v3039_v29 }
 0x3c6   :  { %3074 = vmatpush3.bf16.msra.mxu1 %v3071_v44  ;;  %3042 = vmatpush1.bf16.msra.mxu0 %v3041_v33  ;;  %v3053_v44 = vpack.c.bf16 %v1008_v42, %v1006_v23  ;;  %v3143_v33 = vpack.c.bf16 %v2106_v28, %v2105_v27  ;;  %v2089_v23 = vld [vmem:[%s4467_s9 + $0x260] sm:$0xff]  ;;  %v2090_v42 = vld [vmem:[%s4467_s9 + $0x268] sm:$0xff] }
 0x3c7   :  { %3076 = vmatprep.subr.bf16.mxu1 %v3075_v49  ;;  %3044 = vmatprep.subr.bf16.mxu0 %v3043_v13  ;;  %v3099_v13 = vpack.c.bf16 %v2082_v14, %v2081_v32  ;;  %v3115_v43 = vpack.c.bf16 %v2090_v42, %v2089_v23  ;;  %v2122_v32 = vld [vmem:[%s4467_s9 + $0x348] sm:$0xff] }
 0x3ca   :  { %3078 = vmatpush3.bf16.msra.mxu1 %v3075_v49  ;;  %3046 = vmatpush1.bf16.msra.mxu0 %v3045_v37  ;;  %v1012_v49 = vld [vmem:[%s4469_s11 + $0xf0] sm:$0xff]  ;;  %s3454_s11 = smov [#allocation2]  }
 0x3cb   :  { %3080 = vmatprep.subr.bf16.mxu1 %v3079_v52  ;;  %3048 = vmatprep.subr.bf16.mxu0 %v3047_v38  ;;  %v2085_v38 = vld [vmem:[%s4467_s9 + $0x240] sm:$0xff]  ;;  %s1928_s7 = sshll.u32 %s3454_s11, 4  ;;  %s1929_s7 = int_to_ptr.vmem [resolvable:$true] %s1928_s7 }
 0x3cc   :  { %v3107_v20 = vpack.c.bf16 %v2086_v16, %v2085_v38 }
 0x3ce   :  { %3082 = vmatpush3.bf16.msra.mxu1 %v3079_v52  ;;  %3050 = vmatpush1.bf16.msra.mxu0 %v3049_v19  ;;  %v3057_v52 = vpack.c.bf16 %v1012_v49, %v1010_v48  ;;  %v2088_v19 = vld [vmem:[%s4467_s9 + $0x258] sm:$0xff]  ;;  %v2114_v48 = vld [vmem:[%s4467_s9 + $0x308] sm:$0xff] }
 0x3cf   :  { %3084 = vmatprep.subr.bf16.mxu1 %v3083_v56  ;;  %3052 = vmatprep.subr.bf16.mxu0 %v3051_v41  ;;  %v3111_v41 = vpack.c.bf16 %v2088_v19, %v2087_v40  ;;  %v2127_v19 = vld [vmem:[%s4467_s9 + $0x370] sm:$0xff] }
 0x3d2   :  { %3086 = vmatpush3.bf16.msra.mxu1 %v3083_v56  ;;  %3054 = vmatpush1.bf16.msra.mxu0 %v3053_v44 }
 0x3d3   :  { %3088 = vmatprep.subr.bf16.mxu1 %v3087_v59  ;;  %3056 = vmatprep.subr.bf16.mxu0 %v3055_v45  ;;  %v2113_v45 = vld [vmem:[%s4467_s9 + $0x300] sm:$0xff] }
 0x3d4   :  { %v3155_v49 = vpack.c.bf16 %v2114_v48, %v2113_v45 }
 0x3d6   :  { %3090 = vmatpush3.bf16.msra.mxu1 %v3087_v59  ;;  %3058 = vmatpush1.bf16.msra.mxu0 %v3057_v52  ;;  %v2058_v59 = vld [vmem:[%s4468_s10 + $0x2] ss:$0 sm:$0xff] }
 0x3d7   :  { %3124 = vmatprep.subr.bf16.mxu1 %v3948_v62  ;;  %3092 = vmatprep.subr.bf16.mxu0 %v3091_v4 }
 0x48b   :  { %v2563_v56 = vpop.f32.mrb[18].mxu0 }
 0x48c   :  { %v692_v60 = vpop.f32.mrb[19].mxu0  ;;  %v2612_v61 = vpop.f32.mrb[12].mxu1  ;;  %v4066_v2 = vadd.f32 %v2563_v56, %v2034_v55 }
 0x48d   :  { %v693_v63 = vadd.f32 %v2034_v55, %v692_v60  ;;  %v975_v0 = vadd.f32 %v2612_v61, %v2058_v59  ;;  %v969_v1 = vpop.f32.mrb[13].mxu1  ;;  %v1022_v60 = vsub.s32 1, %v1017_v57 }
 0x48e   :  { %v970_v5 = vadd.f32 %v2058_v59, %v969_v1  ;;  %v1014_v59 = vld [vmem:[%s4470_s12] sm:$0x3] }
 0x48f   :  { %2645 = vmatprep.mubr.f32.mxu1 %v693_v63  ;;  %3330 = vtanh.f32 %v975_v0  ;;  %v1019_v61 = vrot.slane %v1014_v59, %v1018_v58  ;;  %v2116_v0 = vld [vmem:[%s4467_s9 + $0x318] sm:$0xff]  ;;  %v1023_v1 = vrot.slane %v1014_v59, %v1022_v60 }
 0x490   :  { %2646 = vmatmul.mubr.f32.vlgmr.msra.gmra.mrb[14].mxu1 %v4066_v2  ;;  %3332 = vtanh.f32 %v970_v5 }
 0x491   :  { %3126 = vmatpush3.bf16.msra.mxu1 %v3948_v62  ;;  %2715 = vmatprep.mubr.f32.mxu1 %v693_v63  ;;  %v2104_v62 = vld [vmem:[%s4467_s9 + $0x2c8] sm:$0xff]  ;;  %v2115_v63 = vld [vmem:[%s4467_s9 + $0x310] sm:$0xff] }
 0x492   :  { %3128 = vmatprep.subr.bf16.mxu1 %v3127_v3  ;;  %v3139_v26 = vpack.c.bf16 %v2104_v62, %v2103_v15  ;;  %v3159_v5 = vpack.c.bf16 %v2116_v0, %v2115_v63 }
 0x495   :  { %3130 = vmatpush3.bf16.msra.mxu1 %v3127_v3 }
 0x496   :  { %3132 = vmatprep.subr.bf16.mxu1 %v3131_v9 }
 0x499   :  { %v3331_v18 = vpop.eup %3330  ;;  %3134 = vmatpush3.bf16.msra.mxu1 %v3131_v9 }
 0x49a   :  { %v3333_v25 = vpop.eup %3332  ;;  %3136 = vmatprep.subr.bf16.mxu1 %v3135_v12  ;;  %v981_v31 = vadd.f32 %v3331_v18, %v3765_v54  ;;  %v2108_v54 = vld [vmem:[%s4467_s9 + $0x2e8] sm:$0xff]  ;;  %v3163_v18 = vpack.c.bf16 %v2118_v11, %v2117_v10 }
 0x49b   :  { %v980_v29 = vadd.f32 %v3333_v25, %v3760_v53  ;;  %v2107_v53 = vld [vmem:[%s4467_s9 + $0x2e0] sm:$0xff]  ;;  %v2119_v25 = vld [vmem:[%s4467_s9 + $0x330] sm:$0xff] }
 0x49c   :  { %v3147_v35 = vpack.c.bf16 %v2108_v54, %v2107_v53  ;;  %v2123_v53 = vld [vmem:[%s4467_s9 + $0x350] sm:$0xff]  ;;  %v2124_v54 = vld [vmem:[%s4467_s9 + $0x358] sm:$0xff] }
 0x49d   :  { %3138 = vmatpush3.bf16.msra.mxu1 %v3135_v12  ;;  %1091 = vmatmul.mubr.f32.vlgmr.msra.gmra.mrb[20].mxu0 %v980_v29 }
 0x49e   :  { %3140 = vmatprep.subr.bf16.mxu1 %v3139_v26  ;;  %1096 = vmatprep.mubr.f32.mxu0 %v3452_v7  ;;  %v2084_v7 = vld [vmem:[%s4467_s9 + $0x238] sm:$0xff] }
 0x49f   :  { %3094 = vmatpush3.bf16.msra.mxu0 %v3091_v4  ;;  %v3103_v37 = vpack.c.bf16 %v2084_v7, %v2083_v34  ;;  %v3175_v34 = vpack.c.bf16 %v2124_v54, %v2123_v53  ;;  %v2143_v53 = vld [vmem:[%s4467_s9 + $0x3d0] sm:$0xff]  ;;  %v2144_v54 = vld [vmem:[%s4467_s9 + $0x3d8] sm:$0xff] }
 0x4a0   :  { %3096 = vmatprep.subr.bf16.mxu0 %v3095_v30 }
 0x4a1   :  { %3142 = vmatpush3.bf16.msra.mxu1 %v3139_v26  ;;  %1097 = vmatmul.mubr.f32.gmra.mrb[22].mxu0 %v981_v31  ;;  %v2120_v26 = vld [vmem:[%s4467_s9 + $0x338] sm:$0xff]  ;;  %v2121_v31 = vld [vmem:[%s4467_s9 + $0x340] sm:$0xff] }
 0x4a2   :  { %3144 = vmatprep.subr.bf16.mxu1 %v3143_v33 }
 0x4a3   :  { %3098 = vmatpush3.bf16.msra.mxu0 %v3095_v30  ;;  %v3167_v30 = vpack.c.bf16 %v2120_v26, %v2119_v25  ;;  %v2136_v25 = vld [vmem:[%s4467_s9 + $0x398] sm:$0xff] }
 0x4a4   :  { %3100 = vmatprep.subr.bf16.mxu0 %v3099_v13 }
 0x4a5   :  { %3146 = vmatpush3.bf16.msra.mxu1 %v3143_v33  ;;  %v3171_v33 = vpack.c.bf16 %v2122_v32, %v2121_v31  ;;  %v2140_v31 = vld [vmem:[%s4467_s9 + $0x3b8] sm:$0xff] }
 0x4a6   :  { %3148 = vmatprep.subr.bf16.mxu1 %v3147_v35 }
 0x4a7   :  { %3102 = vmatpush3.bf16.msra.mxu0 %v3099_v13  ;;  %v2112_v13 = vld [vmem:[%s4468_s10 + $0x5] ss:$0 sm:$0xff] }
 0x4a8   :  { %3104 = vmatprep.subr.bf16.mxu0 %v3103_v37 }
 0x4a9   :  { %3150 = vmatpush3.bf16.msra.mxu1 %v3147_v35  ;;  %v2125_v35 = vld [vmem:[%s4467_s9 + $0x360] sm:$0xff] }
 0x4aa   :  { %3152 = vmatprep.subr.bf16.mxu1 %v3151_v39 }
 0x4ab   :  { %3106 = vmatpush3.bf16.msra.mxu0 %v3103_v37 }
 0x4ac   :  { %3108 = vmatprep.subr.bf16.mxu0 %v3107_v20 }
 0x4ad   :  { %3154 = vmatpush3.bf16.msra.mxu1 %v3151_v39 }
 0x4af   :  { %3110 = vmatpush3.bf16.msra.mxu0 %v3107_v20  ;;  %v3179_v20 = vpack.c.bf16 %v2126_v36, %v2125_v35  ;;  %v2147_v36 = vld [vmem:[%s4467_s9 + $0x3f0] sm:$0xff] }
 0x4b0   :  { %2716 = vmatmul.mubr.f32.vlgmr.msra.gmra.mrb[16].mxu1 %v4066_v2  ;;  %3112 = vmatprep.subr.bf16.mxu0 %v3111_v41 }
 0x4b1   :  { %2757 = vmatprep.mubr.msk.f32.mxu1 %vm796_vm3, %v3803_v47  ;;  %v2091_v47 = vld [vmem:[%s4467_s9 + $0x270] sm:$0xff] }
 0x4b2   :  { %v3119_v44 = vpack.c.bf16 %v2092_v22, %v2091_v47  ;;  %v2094_v22 = vld [vmem:[%s4468_s10 + $0x4] ss:$0 sm:$0xff] }
 0x4b3   :  { %3114 = vmatpush3.bf16.msra.mxu0 %v3111_v41  ;;  %v2128_v41 = vld [vmem:[%s4467_s9 + $0x378] sm:$0xff] }
 0x4b4   :  { %3116 = vmatprep.subr.bf16.mxu0 %v3115_v43  ;;  %v3183_v42 = vpack.c.bf16 %v2128_v41, %v2127_v19  ;;  %v2155_v41 = vld [vmem:[%s4467_s9 + $0x420] sm:$0xff] }
 0x4b7   :  { %3118 = vmatpush3.bf16.msra.mxu0 %v3115_v43 }
 0x4b8   :  { %3120 = vmatprep.subr.bf16.mxu0 %v3119_v44 }
 0x4bb   :  { %3122 = vmatpush3.bf16.msra.mxu0 %v3119_v44 }
 0x4bc   :  { %3156 = vmatprep.subr.bf16.mxu0 %v3155_v49 }
 0x563   :  { %v2647_v52 = vpop.f32.mrb[14].mxu1 }
 0x564   :  { %v1212_v4 = vadd.f32 %v2647_v52, %v2076_v50  ;;  %v1206_v55 = vpop.f32.mrb[15].mxu1 }
 0x565   :  { %v1207_v56 = vadd.f32 %v2076_v50, %v1206_v55  ;;  %v2130_v50 = vld [vmem:[%s4468_s10 + $0x6] ss:$0 sm:$0xff] }
 0x567   :  { %3334 = vtanh.f32 %v1207_v56 }
 0x568   :  { %3336 = vtanh.f32 %v1212_v4 }
 0x570   :  { %v1092_v2 = vpop.f32.mrb[20].mxu0 }
 0x571   :  { %v3335_v3 = vpop.eup %3334  ;;  %v1093_v6 = vadd.f32 %v1092_v2, %v1019_v61  ;;  %v1094_v8 = vpop.f32.mrb[21].mxu0 }
 0x572   :  { %v3337_v9 = vpop.eup %3336  ;;  %2680 = vmatprep.mubr.f32.mxu0 %v3335_v3  ;;  %v1095_v12 = vadd.f32 %v1094_v8, %v1023_v1 }
 0x573   :  { %2681 = vmatmul.mubr.f32.vlgmr.msra.gmra.mrb[24].mxu0 %v3337_v9  ;;  %1103 = vst [vmem:[#allocation6] sm:$0xff] %v1093_v6  ;;  %v1538_v6 = vld [vmem:[%s4463_s5 + $0x8] sm:$0xff]  ;;  %v1537_v9 = vld [vmem:[%s4463_s5] sm:$0xff] }
 0x574   :  { %3158 = vmatpush3.bf16.msra.mxu0 %v3155_v49  ;;  %v1105_v15 = vmul.f32 0.5, %v1095_v12  ;;  %v1098_v62 = vpop.f32.mrb[22].mxu0  ;;  %v2133_v12 = vld [vmem:[%s4467_s9 + $0x380] sm:$0xff] }
 0x575   :  { %3160 = vmatprep.subr.bf16.mxu0 %v3159_v5  ;;  %v1099_v21 = vadd.f32 %v1098_v62, %v1019_v61  ;;  %v1100_v24 = vpop.f32.mrb[23].mxu0  ;;  %v1532_v61 = vld [vmem:[%s4466_s8 + $0x8] sm:$0xff] }
 0x576   :  { %v1107_v27 = vmul.f32 1.442695, %v1105_v15  ;;  %v1101_v28 = vadd.f32 %v1100_v24, %v1023_v1  ;;  %v1531_v1 = vld [vmem:[%s4466_s8] sm:$0xff]  ;;  %v2134_v15 = vld [vmem:[%s4467_s9 + $0x388] sm:$0xff]  ;;  %v2135_v24 = vld [vmem:[%s4467_s9 + $0x390] sm:$0xff] }
 0x577   :  { %1104 = vst [vmem:[#allocation6 + $0x8] sm:$0xff] %v1099_v21  ;;  %v3191_v21 = vpack.c.bf16 %v2134_v15, %v2133_v12  ;;  %v3195_v26 = vpack.c.bf16 %v2136_v25, %v2135_v24  ;;  %v2150_v15 = vld [vmem:[%s4468_s10 + $0x7] ss:$0 sm:$0xff] }
 0x578   :  { %3162 = vmatpush3.bf16.msra.mxu0 %v3159_v5  ;;  %3338 = vpow2.f32 %v1107_v27  ;;  %v1106_v29 = vmul.f32 0.5, %v1101_v28  ;;  %v2137_v27 = vld [vmem:[%s4467_s9 + $0x3a0] sm:$0xff]  ;;  %v2138_v28 = vld [vmem:[%s4467_s9 + $0x3a8] sm:$0xff] }
 0x579   :  { %3164 = vmatprep.subr.bf16.mxu0 %v3163_v18 }
 0x57a   :  { %v1109_v14 = vmul.f32 1.442695, %v1106_v29  ;;  %v3199_v29 = vpack.c.bf16 %v2138_v28, %v2137_v27 }
 0x57c   :  { %3166 = vmatpush3.bf16.msra.mxu0 %v3163_v18  ;;  %3340 = vpow2.f32 %v1109_v14  ;;  %v2141_v14 = vld [vmem:[%s4467_s9 + $0x3c0] sm:$0xff] }
 0x57d   :  { %3168 = vmatprep.subr.bf16.mxu0 %v3167_v30 }
 0x580   :  { %3170 = vmatpush3.bf16.msra.mxu0 %v3167_v30  ;;  %v2139_v30 = vld [vmem:[%s4467_s9 + $0x3b0] sm:$0xff] }
 0x581   :  { %3172 = vmatprep.subr.bf16.mxu0 %v3171_v33  ;;  %v3203_v32 = vpack.c.bf16 %v2140_v31, %v2139_v30  ;;  %v1830_v30 = vld [vmem:[%s4471_s13 + $0x40] sm:$0xff]  ;;  %v1831_v31 = vld [vmem:[%s4471_s13 + $0x48] sm:$0xff] }
 0x582   :  { %v3339_v7 = vpop.eup %3338 }
 0x583   :  { %v2717_v17 = vpop.f32.mrb[16].mxu1  ;;  %v1111_v37 = vadd.f32 1e-12, %v3339_v7  ;;  %v2146_v7 = vld [vmem:[%s4467_s9 + $0x3e8] sm:$0xff] }
 0x584   :  { %v1414_v38 = vadd.f32 %v2717_v17, %v2112_v13  ;;  %v1408_v16 = vpop.f32.mrb[17].mxu1  ;;  %3174 = vmatpush3.bf16.msra.mxu0 %v3171_v33  ;;  %v2148_v17 = vld [vmem:[%s4467_s9 + $0x3f8] sm:$0xff] }
 0x585   :  { %v1409_v39 = vadd.f32 %v2112_v13, %v1408_v16  ;;  %3176 = vmatprep.subr.bf16.mxu0 %v3175_v34  ;;  %1113 = vst [vmem:[#allocation7] sm:$0xff] %v1111_v37  ;;  %v3211_v13 = vpack.c.bf16 %v2144_v54, %v2143_v53  ;;  %v3219_v37 = vpack.c.bf16 %v2148_v17, %v2147_v36  ;;  %v2152_v16 = vld [vmem:[%s4467_s9 + $0x408] sm:$0xff]  ;;  %v1836_v53 = vld [vmem:[%s4471_s13 + $0x70] sm:$0xff] }
 0x586   :  { %v3341_v40 = vpop.eup %3340 }
 0x587   :  { %3342 = vtanh.f32 %v1409_v39  ;;  %v1112_v23 = vadd.f32 1e-12, %v3341_v40  ;;  %v2153_v39 = vld [vmem:[%s4467_s9 + $0x410] sm:$0xff]  ;;  %v2154_v40 = vld [vmem:[%s4467_s9 + $0x418] sm:$0xff] }
 0x588   :  { %3344 = vtanh.f32 %v1414_v38  ;;  %3178 = vmatpush3.bf16.msra.mxu0 %v3175_v34  ;;  %v2145_v34 = vld [vmem:[%s4467_s9 + $0x3e0] sm:$0xff]  ;;  %v3227_v19 = vpack.c.bf16 %v2154_v40, %v2153_v39 }
 0x589   :  { %3180 = vmatprep.subr.bf16.mxu0 %v3179_v20  ;;  %1114 = vst [vmem:[#allocation7 + $0x8] sm:$0xff] %v1112_v23  ;;  %v3215_v35 = vpack.c.bf16 %v2146_v7, %v2145_v34  ;;  %v2151_v38 = vld [vmem:[%s4467_s9 + $0x400] sm:$0xff]  ;;  %v2156_v23 = vld [vmem:[%s4467_s9 + $0x428] sm:$0xff] }
 0x58a   :  { %v2168_v7 = vld [vmem:[%s4468_s10 + $0x8] ss:$0 sm:$0xff] }
 0x58c   :  { %3182 = vmatpush3.bf16.msra.mxu0 %v3179_v20  ;;  %v3223_v20 = vpack.c.bf16 %v2152_v16, %v2151_v38 }
 0x58d   :  { %3184 = vmatprep.subr.bf16.mxu0 %v3183_v42 }
 0x590   :  { %3186 = vmatpush3.bf16.msra.mxu0 %v3183_v42  ;;  %v3231_v42 = vpack.c.bf16 %v2156_v23, %v2155_v41 }
 0x591   :  { %v3343_v47 = vpop.eup %3342  ;;  %3224 = vmatprep.subr.bf16.mxu0 %v3223_v20 }
 0x592   :  { %v3345_v43 = vpop.eup %3344  ;;  %2750 = vmatprep.mubr.f32.mxu0 %v3343_v47  ;;  %v2157_v47 = vld [vmem:[%s4467_s9 + $0x430] sm:$0xff] }
 0x593   :  { %2751 = vmatmul.mubr.f32.vlgmr.msra.gmra.mrb[26].mxu0 %v3345_v43  ;;  %v2158_v43 = vld [vmem:[%s4467_s9 + $0x438] sm:$0xff] }
 0x594   :  { %3226 = vmatpush3.bf16.msra.mxu0 %v3223_v20 }
 0x595   :  { %3228 = vmatprep.subr.bf16.mxu0 %v3227_v19 }
 0x598   :  { %3230 = vmatpush3.bf16.msra.mxu0 %v3227_v19 }
 0x599   :  { %3232 = vmatprep.subr.bf16.mxu0 %v3231_v42 }
 0x59c   :  { %3234 = vmatpush3.bf16.msra.mxu0 %v3231_v42 }
 0x646   :  { %v2682_v44 = vpop.f32.mrb[24].mxu0 }
 0x647   :  { %v1314_v45 = vadd.f32 %v2682_v44, %v2094_v22  ;;  %v1308_v48 = vpop.f32.mrb[25].mxu0 }
 0x648   :  { %v1309_v49 = vadd.f32 %v2094_v22, %v1308_v48  ;;  %v3235_v22 = vpack.c.bf16 %v2158_v43, %v2157_v47  ;;  %v2159_v48 = vld [vmem:[%s4467_s9 + $0x440] sm:$0xff] }
 0x649   :  { %1528 = vst [vmem:[#allocation2 + $0x8] sm:$0xff] %v1314_v45 }
 0x64a   :  { %1527 = vst [vmem:[#allocation2] sm:$0xff] %v1309_v49  ;;  %3236 = vmatprep.subr.bf16.mxu0 %v3235_v22 }
 0x64b   :  { %3238 = vmatpush3.bf16.msra.mxu0 %v3235_v22 }
 0x666   :  { %v2752_v51 = vpop.f32.mrb[26].mxu0 }
 0x667   :  { %v1516_v52 = vadd.f32 %v2752_v51, %v2130_v50  ;;  %v1510_v4 = vpop.f32.mrb[27].mxu0  ;;  %v2161_v51 = vld [vmem:[%s4467_s9 + $0x450] sm:$0xff] }
 0x668   :  { %v1511_v55 = vadd.f32 %v2130_v50, %v1510_v4 }
 0x669   :  { %v1520_v56 = vmul.f32 0.5, %v1516_v52  ;;  %v2162_v52 = vld [vmem:[%s4467_s9 + $0x458] sm:$0xff] }
 0x66a   :  { %v1519_v57 = vmul.f32 0.5, %v1511_v55  ;;  %v3243_v4 = vpack.c.bf16 %v2162_v52, %v2161_v51  ;;  %v2163_v55 = vld [vmem:[%s4467_s9 + $0x460] sm:$0xff] }
 0x66b   :  { %v1523_v58 = vmul.f32 1.442695, %v1520_v56  ;;  %v2164_v56 = vld [vmem:[%s4467_s9 + $0x468] sm:$0xff] }
 0x66c   :  { %v1521_v59 = vmul.f32 1.442695, %v1519_v57  ;;  %v3247_v57 = vpack.c.bf16 %v2164_v56, %v2163_v55 }
 0x66d   :  { %3346 = vpow2.f32 %v1523_v58  ;;  %v2165_v58 = vld [vmem:[%s4467_s9 + $0x470] sm:$0xff] }
 0x66e   :  { %3348 = vpow2.f32 %v1521_v59  ;;  %v2166_v59 = vld [vmem:[%s4467_s9 + $0x478] sm:$0xff] }
 0x677   :  { %v3347_v60 = vpop.eup %3346 }
 0x678   :  { %v3349_v63 = vpop.eup %3348  ;;  %v1526_v0 = vadd.f32 1e-12, %v3347_v60  ;;  %v3251_v60 = vpack.c.bf16 %v2166_v59, %v2165_v58 }
 0x679   :  { %v1525_v2 = vadd.f32 1e-12, %v3349_v63  ;;  %v1823_v63 = vld [vmem:[%s4471_s13 + $0x8] sm:$0xff] }
 0x67a   :  { %v1534_v3 = vmul.f32 %v1532_v61, %v1526_v0  ;;  %1530 = vst [vmem:[#allocation4 + $0x8] sm:$0xff] %v1526_v0  ;;  %v1822_v61 = vld [vmem:[%s4471_s13] sm:$0xff]  ;;  %v1824_v0 = vld [vmem:[%s4471_s13 + $0x10] sm:$0xff] }
 0x67b   :  { %v1533_v5 = vmul.f32 %v1531_v1, %v1525_v2  ;;  %1529 = vst [vmem:[#allocation4] sm:$0xff] %v1525_v2  ;;  %v3255_v1 = vpack.c.bf16 %v1823_v63, %v1822_v61  ;;  %v1825_v2 = vld [vmem:[%s4471_s13 + $0x18] sm:$0xff] }
 0x67c   :  { %v1536_v8 = vadd.f32 %v1534_v3, %v1314_v45  ;;  %v3259_v3 = vpack.c.bf16 %v1825_v2, %v1824_v0 }
 0x67d   :  { %v1535_v10 = vadd.f32 %v1533_v5, %v1309_v49  ;;  %v2160_v49 = vld [vmem:[%s4467_s9 + $0x448] sm:$0xff]  ;;  %v1826_v5 = vld [vmem:[%s4471_s13 + $0x20] sm:$0xff] }
 0x67e   :  { %v4229_v11 = vadd.f32 %v1538_v6, %v1536_v8  ;;  %v3239_v50 = vpack.c.bf16 %v2160_v49, %v2159_v48  ;;  %v1827_v6 = vld [vmem:[%s4471_s13 + $0x28] sm:$0xff] }
 0x67f   :  { %v4237_v62 = vadd.f32 %v1537_v9, %v1535_v10  ;;  %v3263_v8 = vpack.c.bf16 %v1827_v6, %v1826_v5  ;;  %v1828_v9 = vld [vmem:[%s4471_s13 + $0x30] sm:$0xff]  ;;  %v1829_v10 = vld [vmem:[%s4471_s13 + $0x38] sm:$0xff] }
 0x680   :  { %3240 = vmatprep.subr.bf16.mxu0 %v3239_v50  ;;  %v3267_v12 = vpack.c.bf16 %v1829_v10, %v1828_v9 }
 0x681   :  { %v3187_v18 = vpack.c.bf16 %v4229_v11, %v4237_v62  ;;  %3242 = vmatpush3.bf16.msra.mxu0 %v3239_v50 }
 0x682   :  { %3244 = vmatprep.subr.bf16.mxu0 %v3243_v4 }
 0x683   :  { %3188 = vmatprep.subr.bf16.mxu1 %v3187_v18 }
 0x684   :  { %3190 = vmatpush3.bf16.msra.mxu1 %v3187_v18 }
 0x685   :  { %3192 = vmatprep.subr.bf16.mxu1 %v3191_v21  ;;  %3246 = vmatpush3.bf16.msra.mxu0 %v3243_v4 }
 0x686   :  { %3248 = vmatprep.subr.bf16.mxu0 %v3247_v57 }
 0x687   :  { %2758 = vmatmul.mubr.msk.f32.vlgmr.msra.gmra.mrb[18].mxu1 %vm796_vm3, %v3801_v46  ;;  %v2142_v46 = vld [vmem:[%s4467_s9 + $0x3c8] sm:$0xff] }
 0x688   :  { %3194 = vmatpush3.bf16.msra.mxu1 %v3191_v21  ;;  %v3207_v33 = vpack.c.bf16 %v2142_v46, %v2141_v14  ;;  %v1832_v14 = vld [vmem:[%s4471_s13 + $0x50] sm:$0xff]  ;;  %v1834_v46 = vld [vmem:[%s4471_s13 + $0x60] sm:$0xff] }
 0x689   :  { %3196 = vmatprep.subr.bf16.mxu1 %v3195_v26  ;;  %3250 = vmatpush3.bf16.msra.mxu0 %v3247_v57 }
 0x68a   :  { %3252 = vmatprep.subr.bf16.mxu0 %v3251_v60 }
 0x68c   :  { %3198 = vmatpush3.bf16.msra.mxu1 %v3195_v26 }
 0x68d   :  { %3200 = vmatprep.subr.bf16.mxu1 %v3199_v29  ;;  %3254 = vmatpush3.bf16.msra.mxu0 %v3251_v60 }
 0x690   :  { %3202 = vmatpush3.bf16.msra.mxu1 %v3199_v29 }
 0x691   :  { %3204 = vmatprep.subr.bf16.mxu1 %v3203_v32 }
 0x694   :  { %3206 = vmatpush3.bf16.msra.mxu1 %v3203_v32  ;;  %v3271_v32 = vpack.c.bf16 %v1831_v31, %v1830_v30 }
 0x695   :  { %3208 = vmatprep.subr.bf16.mxu1 %v3207_v33 }
 0x698   :  { %3210 = vmatpush3.bf16.msra.mxu1 %v3207_v33  ;;  %v1835_v33 = vld [vmem:[%s4471_s13 + $0x68] sm:$0xff] }
 0x699   :  { %3212 = vmatprep.subr.bf16.mxu1 %v3211_v13  ;;  %v3279_v54 = vpack.c.bf16 %v1835_v33, %v1834_v46 }
 0x69c   :  { %3214 = vmatpush3.bf16.msra.mxu1 %v3211_v13  ;;  %v1837_v13 = vld [vmem:[%s4471_s13 + $0x78] sm:$0xff] }
 0x69d   :  { %3216 = vmatprep.subr.bf16.mxu1 %v3215_v35  ;;  %v3283_v34 = vpack.c.bf16 %v1837_v13, %v1836_v53 }
 0x6a0   :  { %3218 = vmatpush3.bf16.msra.mxu1 %v3215_v35 }
 0x6a1   :  { %3220 = vmatprep.subr.bf16.mxu1 %v3219_v37 }
 0x6a4   :  { %3222 = vmatpush3.bf16.msra.mxu1 %v3219_v37 }
 0x6a5   :  { %3256 = vmatprep.subr.bf16.mxu1 %v3255_v1 }
 0x75a   :  { %v2759_v44 = vpop.f32.mrb[18].mxu1 }
 0x75b   :  { %v1607_v45 = vpop.f32.mrb[19].mxu1 }
 0x75c   :  { %2792 = vmatprep.mubr.f32.mxu1 %v1607_v45 }
 0x75d   :  { %2793 = vmatmul.mubr.f32.vlgmr.msra.gmra.mrb[20].mxu1 %v2759_v44 }
 0x75e   :  { %3258 = vmatpush3.bf16.msra.mxu1 %v3255_v1 }
 0x75f   :  { %3260 = vmatprep.subr.bf16.mxu1 %v3259_v3 }
 0x762   :  { %3262 = vmatpush3.bf16.msra.mxu1 %v3259_v3 }
 0x763   :  { %3264 = vmatprep.subr.bf16.mxu1 %v3263_v8 }
 0x766   :  { %3266 = vmatpush3.bf16.msra.mxu1 %v3263_v8 }
 0x767   :  { %3268 = vmatprep.subr.bf16.mxu1 %v3267_v12 }
 0x76a   :  { %3270 = vmatpush3.bf16.msra.mxu1 %v3267_v12 }
 0x76b   :  { %3272 = vmatprep.subr.bf16.mxu1 %v3271_v32 }
 0x76e   :  { %3274 = vmatpush3.bf16.msra.mxu1 %v3271_v32 }
 0x830   :  { %v2794_v18 = vpop.f32.mrb[20].mxu1 }
 0x831   :  { %v1713_v21 = vadd.f32 %v2794_v18, %v2150_v15  ;;  %v1707_v24 = vpop.f32.mrb[21].mxu1 }
 0x832   :  { %v1708_v25 = vadd.f32 %v2150_v15, %v1707_v24 }
 0x833   :  { %3350 = vtanh.f32 %v1713_v21 }
 0x834   :  { %3352 = vtanh.f32 %v1708_v25 }
 0x83d   :  { %v3351_v26 = vpop.eup %3350 }
 0x83e   :  { %v3353_v27 = vpop.eup %3352  ;;  %v1719_v29 = vadd.f32 %v3351_v26, %v4229_v11  ;;  %v1833_v11 = vld [vmem:[%s4471_s13 + $0x58] sm:$0xff]  ;;  %s3453_s13 = smov [#allocation4]  }
 0x83f   :  { %v1718_v28 = vadd.f32 %v3353_v27, %v4237_v62  ;;  %v3275_v62 = vpack.c.bf16 %v1833_v11, %v1832_v14  ;;  %s1940_s20 = sshll.u32 %s3453_s13, 4  ;;  %s1941_s20 = int_to_ptr.vmem [resolvable:$true] %s1940_s20 }
 0x840   :  { %s3358_s21 = scalar_lea.vmem %s1941_s20, 256  ;;  %p3363_p1 = scmp.lt.s32.totalorder %s1941_s20, %s1941_s20 }
 0x841   :  { %2827 = vmatprep.mubr.f32.mxu0 %v1718_v28  ;;  %3276 = vmatprep.subr.bf16.mxu1 %v3275_v62  ;;  %p3359_p0 = scmp.ne.s32.totalorder %s1941_s20, %s3358_s21  ;;  %p3364_p2 = scmp.lt.s32.totalorder %s3358_s21, %s3358_s21 }
 0x842   :  { %2828 = vmatmul.mubr.f32.vlgmr.msra.gmra.mrb[28].mxu0 %v1719_v29  ;;  %3278 = vmatpush3.bf16.msra.mxu1 %v3275_v62 }
 0x843   :  { %3280 = vmatprep.subr.bf16.mxu1 %v3279_v54  ;;  %p3365_p3 = por %p3364_p2, %p3363_p1 }
 0x845   :  { %p3366_p4 = pnand %p3365_p3, %p3359_p0 }
 0x846   :  { %3282 = vmatpush3.bf16.msra.mxu1 %v3279_v54 }
 0x847   :  { %3284 = vmatprep.subr.bf16.mxu1 %v3283_v34 }
 0x84a   :  { %3286 = vmatpush3.bf16.msra.mxu1 %v3283_v34 }
 0x915   :  { %v2829_v35 = vpop.f32.mrb[28].mxu0 }
 0x916   :  { %v1817_v36 = vadd.f32 %v2829_v35, %v2168_v7  ;;  %v1811_v17 = vpop.f32.mrb[29].mxu0 }
 0x917   :  { %v1812_v37 = vadd.f32 %v2168_v7, %v1811_v17 }
 0x919   :  { %3354 = vtanh.f32 %v1812_v37 }
 0x91a   :  { %3356 = vtanh.f32 %v1817_v36 }
 0x923   :  { %v3355_v38 = vpop.eup %3354 }
 0x924   :  { %v3357_v16 = vpop.eup %3356  ;;  %2862 = vmatprep.mubr.f32.mxu1 %v3355_v38 }
 0x925   :  { %2863 = vmatmul.mubr.f32.vlgmr.msra.gmra.mrb[22].mxu1 %v3357_v16 }
 0x926   :  { %3369 = shalt.err (!%p3366_p4)
}
 0x927   :  { %s3370_s4 = scalar_lea.hbm %s4474_s16, 256 }
 0x928   :  { %p3371_p5 = scmp.ne.s32.totalorder %s4474_s16, %s3370_s4  ;;  %p3374_p6 = scmp.lt.u32.totalorder %s3370_s4, %s4474_s16 }
 0x92a   :  { %p3376_p7 = pnand %p3374_p6, %p3371_p5 }
 0x92c   :  { %3379 = shalt.err (!%p3376_p7)
}
 0x92d   :  { %s3455_s3 = smov 128   ;;  %s3456_s1 = smov 8  }
 0x92e   :  { %1946 = dma.vmem_to_hbm [thread:$0]  %s1941_s20, 256, %s4474_s16, [#allocation5], %s3455_s3, %s3455_s3, %s3456_s1  }
 0x92f   :  { %s3380_s8 = scalar_lea.vmem %s1929_s7, 256  ;;  %p3385_p9 = scmp.lt.s32.totalorder %s1929_s7, %s1929_s7 }
 0x930   :  { %p3381_p8 = scmp.ne.s32.totalorder %s1929_s7, %s3380_s8  ;;  %p3386_p10 = scmp.lt.s32.totalorder %s3380_s8, %s3380_s8 }
 0x932   :  { %p3387_p11 = por %p3386_p10, %p3385_p9 }
 0x934   :  { %p3388_p12 = pnand %p3387_p11, %p3381_p8 }
 0x936   :  { %3391 = shalt.err (!%p3388_p12)
}
 0x937   :  { %s3392_s12 = scalar_lea.hbm %s4473_s15, 256 }
 0x938   :  { %p3393_p13 = scmp.ne.s32.totalorder %s4473_s15, %s3392_s12  ;;  %p3396_p0 = scmp.lt.u32.totalorder %s3392_s12, %s4473_s15 }
 0x93a   :  { %p3398_p1 = pnand %p3396_p0, %p3393_p13 }
 0x93c   :  { %3401 = shalt.err (!%p3398_p1)
}
 0x93d   :  { %1934 = dma.vmem_to_hbm [thread:$0]  %s1929_s7, 256, %s4473_s15, [#allocation3], %s3455_s3, %s3455_s3, %s3456_s1  }
 0x93e   :  { %s3457_s13 = smov [#allocation6]   ;;  %s3458_s11 = smov [#allocation7]  }
 0x93f   :  { %s1952_s20 = sshll.u32 %s3457_s13, 4  ;;  %s1964_s21 = sshll.u32 %s3458_s11, 4  ;;  %s1953_s20 = int_to_ptr.vmem [resolvable:$true] %s1952_s20  ;;  %s1965_s21 = int_to_ptr.vmem [resolvable:$true] %s1964_s21 }
 0x940   :  { %s3402_s10 = scalar_lea.vmem %s1953_s20, 256  ;;  %p3407_p3 = scmp.lt.s32.totalorder %s1953_s20, %s1953_s20 }
 0x941   :  { %p3403_p2 = scmp.ne.s32.totalorder %s1953_s20, %s3402_s10  ;;  %p3408_p4 = scmp.lt.s32.totalorder %s3402_s10, %s3402_s10 }
 0x943   :  { %p3409_p5 = por %p3408_p4, %p3407_p3 }
 0x945   :  { %p3410_p6 = pnand %p3409_p5, %p3403_p2 }
 0x947   :  { %3413 = shalt.err (!%p3410_p6)
}
 0x948   :  { %s3414_s28 = scalar_lea.hbm %s4475_s17, 256 }
 0x949   :  { %p3415_p7 = scmp.ne.s32.totalorder %s4475_s17, %s3414_s28  ;;  %p3418_p8 = scmp.lt.u32.totalorder %s3414_s28, %s4475_s17 }
 0x94b   :  { %p3420_p9 = pnand %p3418_p8, %p3415_p7 }
 0x94d   :  { %3423 = shalt.err (!%p3420_p9)
}
 0x94e   :  { %1958 = dma.vmem_to_hbm [thread:$0]  %s1953_s20, 256, %s4475_s17, [#allocation5], %s3455_s3, %s3455_s3, %s3456_s1  }
 0x94f   :  { %s3424_s27 = scalar_lea.vmem %s1965_s21, 256  ;;  %p3429_p11 = scmp.lt.s32.totalorder %s1965_s21, %s1965_s21 }
 0x950   :  { %p3425_p10 = scmp.ne.s32.totalorder %s1965_s21, %s3424_s27  ;;  %p3430_p12 = scmp.lt.s32.totalorder %s3424_s27, %s3424_s27 }
 0x952   :  { %p3431_p13 = por %p3430_p12, %p3429_p11 }
 0x954   :  { %p3432_p0 = pnand %p3431_p13, %p3425_p10 }
 0x956   :  { %3435 = shalt.err (!%p3432_p0)
}
 0x957   :  { %s3436_s9 = scalar_lea.hbm %s4476_s18, 256 }
 0x958   :  { %p3437_p1 = scmp.ne.s32.totalorder %s4476_s18, %s3436_s9  ;;  %p3440_p2 = scmp.lt.u32.totalorder %s3436_s9, %s4476_s18 }
 0x95a   :  { %p3442_p3 = pnand %p3440_p2, %p3437_p1 }
 0x95c   :  { %3445 = shalt.err (!%p3442_p3)
}
 0x95d   :  { %1970 = dma.vmem_to_hbm [thread:$0]  %s1965_s21, 256, %s4476_s18, [#allocation8], %s3455_s3, %s3455_s3, %s3456_s1   ;;  %vm1920_vm4 = vcmask 318464  }
 0x95e   :  { %v2169_v39 = vld [vmem:[%s4472_s14] ss:$0 sm:$0xff] }
 0x9f8   :  { %v2864_v20 = vpop.f32.mrb[22].mxu1 }
 0x9f9   :  { %v1917_v40 = vadd.f32 %v2864_v20, %v2169_v39  ;;  %v1911_v19 = vpop.f32.mrb[23].mxu1 }
 0x9fa   :  { %v1912_v41 = vadd.f32 %v2169_v39, %v1911_v19 }
 0x9fb   :  { %1922 = vst.msk [vmem:[%s4477_s19 + $0x8] sm:$0xff] %vm1920_vm4, %v1917_v40 }
 0x9fc   :  { %1921 = vst.msk [vmem:[%s4477_s19] sm:$0xff] %vm1920_vm4, %v1912_v41 }
 0x9fd   :  { %3446 = dma.done.wait [#allocation3], 256  }
 0x9fe   :  { %3447 = vsyncadd [#allocation3], 4294967040 }
 0x9ff   :  { %3448 = dma.done.wait [#allocation5], 512  }
 0xa00   :  { %3449 = vsyncadd [#allocation5], 4294966784 }
 0xa01   :  { %3450 = dma.done.wait [#allocation8], 256  }
 0xa02   :  { %3451 = vsyncadd [#allocation8], 4294967040 }
 0xa03   :  { %1987 = vsyncpa [#allocation3], 1 }
 0xa04   :  { %1988 = vsyncpa [#allocation5], 1 }
 0xa05   :  { %1989 = vsyncpa [#allocation8], 1 }

</bundles_post_ra>
